<compile_context>
chip_gen: v7x
topology: tpu7x:2x2x1
jax: 0.10.0
libtpu: 0.0.40
codegen_flags: <defaults>
</compile_context>

<pallas_src>
import jax
import jax.numpy as jnp
from jax.experimental import pallas as pl
from jax.experimental.pallas import tpu as pltpu

# Small shapes consistent with the module (seq_len == FRAMES == LSTM hidden).
FEATURES = 24
FRAMES = 16          # hidden size == sequence length (required by the view)
BATCH = 8
LIN1_OUT = 26
NUM_CLASSES = 2

# Feed bf16 operands to the MXU (f32 accumulation kept).  Single-pass MXU on
# v6e/v7x; on v5e only the matmul operands go bf16 (all VPU/EUP work is f32).
# Default False => exact PyTorch float32 numerics.
MXU_BF16 = False


def net_kernel(x_ref, wih_ref, whh_ref, b_ref, w1_ref, b1_ref, w2_ref, b2_ref,
               out_ref, xw_ref, hs_ref):
    # x_ref:   (B, T*F)   batch-major x, flattened over (T, F)  -- free reshape
    # wih_ref: (F, 4H)    LSTM input weights   (transposed)
    # whh_ref: (H, 4H)    LSTM recurrent weights (transposed)
    # b_ref:   (1, 4H)    b_ih + b_hh
    # w1_ref:  (T*H, 26)  lin1 weight (transposed)
    # b1_ref:  (1, 26), w2_ref: (26, 2), b2_ref: (1, 2)
    # out_ref: (B, 2)
    # xw_ref:  (T*B, 4H)  VMEM scratch, time-major input projection
    # hs_ref:  (B, T*H)   VMEM scratch, concatenated hidden states
    B = out_ref.shape[0]
    H = whh_ref.shape[0]
    F = wih_ref.shape[0]
    T = x_ref.shape[1] // F

    mxu = jnp.bfloat16 if MXU_BF16 else jnp.float32

    # Loop-invariant weights loaded once (stay resident in vregs).
    wih = wih_ref[...]                                   # (F, 4H)
    whh = whh_ref[...]                                   # (H, 4H)
    bias = jnp.broadcast_to(b_ref[...], (B, 4 * H))      # hoisted broadcast

    # ---- (1) Input projection, staged time-major through VMEM scratch. ----
    # 16 small (B,F)@(F,4H) matmuls; independent of the recurrence, so the
    # scheduler overlaps them with it.  Storing immediately bounds live ranges.
    for t in range(T):
        x_t = x_ref[:, t * F:(t + 1) * F]                # (B, F) static slice
        xw_ref[t * B:(t + 1) * B, :] = (
            jnp.dot(x_t.astype(mxu), wih,
                    preferred_element_type=jnp.float32) + bias)

    # ---- (2) Hoisted activation constants (sigmoid via one tanh pass). ----
    # gates layout along lanes: [ i | f | g | o ], each H=16 lanes wide.
    lane = jax.lax.broadcasted_iota(jnp.int32, (B, 4 * H), 1)
    is_g = (lane >= 2 * H) & (lane < 3 * H)
    act_scale = jnp.where(is_g, 1.0, 0.5).astype(jnp.float32)  # pre & post mul
    act_shift = jnp.where(is_g, 0.0, 0.5).astype(jnp.float32)  # post add

    # ---- (3) Fully-unrolled recurrence: per step one (B,H)@(H,4H) MXU push,
    #      ONE tanh over the full 4H gate vector, tanh(c), cheap VPU updates.
    h = jnp.zeros((B, H), jnp.float32)
    c = jnp.zeros((B, H), jnp.float32)
    for t in range(T):
        gx = xw_ref[t * B:(t + 1) * B, :]                # (B, 4H), aligned vld
        gates = gx + jnp.dot(h.astype(mxu), whh,
                             preferred_element_type=jnp.float32)
        # sigmoid(x)=0.5*tanh(x/2)+0.5 on i/f/o lanes, tanh(x) on g lanes:
        a = jnp.tanh(gates * act_scale) * act_scale + act_shift
        i = a[:, 0 * H:1 * H]
        f = a[:, 1 * H:2 * H]
        g = a[:, 2 * H:3 * H]
        o = a[:, 3 * H:4 * H]
        c = f * c + i * g
        h = o * jnp.tanh(c)
        hs_ref[:, t * H:(t + 1) * H] = h                 # off-chain store

    # ---- (4) lin1 as ONE (B, T*H)@(T*H, 26) matmul + bias + ReLU. ----------
    flat = hs_ref[...]                                   # (B, T*H)
    z1 = jnp.maximum(
        jnp.dot(flat.astype(mxu), w1_ref[...],
                preferred_element_type=jnp.float32) + b1_ref[...], 0.0)

    # ---- (5) Head + softmax(dim=1); division via EUP approximate recip. ----
    z2 = (jnp.dot(z1.astype(mxu), w2_ref[...],
                  preferred_element_type=jnp.float32) + b2_ref[...])
    z2 = z2 - jnp.max(z2, axis=1, keepdims=True)
    e = jnp.exp(z2)
    out_ref[...] = e * pl.reciprocal(jnp.sum(e, axis=1, keepdims=True),
                                     approx=True)


def prepare_params(params):
    """One-time weight preprocessing (kept out of the jitted per-call path)."""
    w_ih, w_hh, b_ih, b_hh, w1, b1, w2, b2 = params
    H = w_hh.shape[1]
    wdt = jnp.bfloat16 if MXU_BF16 else jnp.float32
    wih_t = w_ih.T.astype(wdt)                                # (F, 4H)
    whh_t = w_hh.T.astype(wdt)                                # (H, 4H)
    b = (b_ih + b_hh).reshape(1, 4 * H).astype(jnp.float32)   # (1, 4H)
    w1t = w1.T.astype(wdt)                                    # (T*H, 26)
    b1r = b1.reshape(1, -1).astype(jnp.float32)               # (1, 26)
    w2t = w2.T.astype(wdt)                                    # (26, 2)
    b2r = b2.reshape(1, -1).astype(jnp.float32)               # (1, 2)
    return (wih_t, whh_t, b, w1t, b1r, w2t, b2r)


@jax.jit
def net_forward(x, prepped):
    """x: (B, T, F) batch_first, exactly like the PyTorch module."""
    wih_t, whh_t, b, w1t, b1r, w2t, b2r = prepped
    B, T, F = x.shape
    H = whh_t.shape[0]

    # Layout-preserving (free) flatten -- no transpose op, no extra dispatch.
    x2d = x.astype(jnp.float32).reshape(B, T * F)

    vmem = pl.BlockSpec(memory_space=pltpu.MemorySpace.VMEM)
    return pl.pallas_call(
        net_kernel,
        out_shape=jax.ShapeDtypeStruct((B, NUM_CLASSES), jnp.float32),
        in_specs=[vmem] * 8,
        out_specs=vmem,
        scratch_shapes=[
            pltpu.VMEM((T * B, 4 * H), jnp.float32),   # time-major x @ W_ih^T
            pltpu.VMEM((B, T * H), jnp.float32),       # concatenated h_t
        ],
    )(x2d, wih_t, whh_t, b, w1t, b1r, w2t, b2r)


def reference_forward(x, params):
    """Pure-JAX reference matching the PyTorch semantics."""
    w_ih, w_hh, b_ih, b_hh, w1, b1, w2, b2 = params
    B, T, F = x.shape
    H = w_hh.shape[1]
    h = jnp.zeros((B, H), jnp.float32)
    c = jnp.zeros((B, H), jnp.float32)
    hs = []
    for t in range(T):
        gates = x[:, t, :] @ w_ih.T + b_ih + h @ w_hh.T + b_hh
        i = jax.nn.sigmoid(gates[:, :H])
        f = jax.nn.sigmoid(gates[:, H:2 * H])
        g = jnp.tanh(gates[:, 2 * H:3 * H])
        o = jax.nn.sigmoid(gates[:, 3 * H:])
        c = f * c + i * g
        h = o * jnp.tanh(c)
        hs.append(h)
    out_seq = jnp.stack(hs, axis=1)            # (B, T, H)
    flat = out_seq.reshape(-1, T * H)          # (B, FRAMES^2)
    z1 = jax.nn.relu(flat @ w1.T + b1)
    z2 = z1 @ w2.T + b2
    return jax.nn.softmax(z2, axis=1)


def init_params(key):
    H, F = FRAMES, FEATURES
    ks = jax.random.split(key, 8)
    s = 1.0 / jnp.sqrt(H)
    w_ih = jax.random.uniform(ks[0], (4 * H, F), jnp.float32, -s, s)
    w_hh = jax.random.uniform(ks[1], (4 * H, H), jnp.float32, -s, s)
    b_ih = jax.random.uniform(ks[2], (4 * H,), jnp.float32, -s, s)
    b_hh = jax.random.uniform(ks[3], (4 * H,), jnp.float32, -s, s)
    s1 = 1.0 / jnp.sqrt(H * H)
    w1 = jax.random.uniform(ks[4], (LIN1_OUT, H * H), jnp.float32, -s1, s1)
    b1 = jax.random.uniform(ks[5], (LIN1_OUT,), jnp.float32, -s1, s1)
    s2 = 1.0 / jnp.sqrt(LIN1_OUT)
    w2 = jax.random.uniform(ks[6], (NUM_CLASSES, LIN1_OUT), jnp.float32, -s2, s2)
    b2 = jax.random.uniform(ks[7], (NUM_CLASSES,), jnp.float32, -s2, s2)
    return (w_ih, w_hh, b_ih, b_hh, w1, b1, w2, b2)


if __name__ == "__main__":
    key = jax.random.PRNGKey(0)
    kx, kp = jax.random.split(key)
    # PyTorch forward expects (BATCH, FRAMES, FEATURES) with seq_len == FRAMES.
    x = jax.random.normal(kx, (BATCH, FRAMES, FEATURES), jnp.float32)
    params = init_params(kp)
    prepped = prepare_params(params)     # one-time weight prep, outside jit

    out = net_forward(x, prepped)
    out = jax.block_until_ready(out)

    ref = reference_forward(x, params)
    assert out.shape == (BATCH, NUM_CLASSES)
    # Tolerance accounts for the EUP approximate reciprocal in the softmax and
    # the (mathematically exact) sigmoid-via-tanh gate fusion; everything else
    # is exact f32 with MXU_BF16=False.  (If MXU_BF16=True, relax to ~2e-2.)
    tol = 1e-3 if not MXU_BF16 else 2e-2
    assert jnp.allclose(out, ref, atol=tol, rtol=tol), (
        f"max err {jnp.max(jnp.abs(out - ref))}")
    print("KERNEL_OK")
</pallas_src>

<mosaic_0001>
module attributes {stable_mosaic.version = 11 : i64} {
  func.func @net_kernel(%arg0: memref<8x384xf32, #tpu.memory_space<vmem>>, %arg1: memref<24x64xf32, #tpu.memory_space<vmem>>, %arg2: memref<16x64xf32, #tpu.memory_space<vmem>>, %arg3: memref<1x64xf32, #tpu.memory_space<vmem>>, %arg4: memref<256x26xf32, #tpu.memory_space<vmem>>, %arg5: memref<1x26xf32, #tpu.memory_space<vmem>>, %arg6: memref<26x2xf32, #tpu.memory_space<vmem>>, %arg7: memref<1x2xf32, #tpu.memory_space<vmem>>, %arg8: memref<8x2xf32, #tpu.memory_space<vmem>>, %arg9: memref<128x64xf32, #tpu.memory_space<vmem>>, %arg10: memref<8x256xf32, #tpu.memory_space<vmem>>) attributes {dimension_semantics = [], scalar_prefetch = 0 : i64, scratch_operands = 2 : i64, tpu.core_type = #tpu.core_type<tc>} {
    %c0 = arith.constant 0 : index
    %c0_0 = arith.constant 0 : index
    %0 = vector.load %arg1[%c0, %c0_0] : memref<24x64xf32, #tpu.memory_space<vmem>>, vector<24x64xf32>
    %c0_1 = arith.constant 0 : index
    %c0_2 = arith.constant 0 : index
    %1 = vector.load %arg2[%c0_1, %c0_2] : memref<16x64xf32, #tpu.memory_space<vmem>>, vector<16x64xf32>
    %c0_3 = arith.constant 0 : index
    %c0_4 = arith.constant 0 : index
    %2 = vector.load %arg3[%c0_3, %c0_4] : memref<1x64xf32, #tpu.memory_space<vmem>>, vector<1x64xf32>
    %3 = vector.shape_cast %2 : vector<1x64xf32> to vector<1x64xf32>
    %4 = vector.broadcast %3 : vector<1x64xf32> to vector<8x64xf32>
    %c0_5 = arith.constant 0 : index
    %c0_6 = arith.constant 0 : index
    %5 = vector.load %arg0[%c0_5, %c0_6] : memref<8x384xf32, #tpu.memory_space<vmem>>, vector<8x24xf32>
    %cst = arith.constant dense<0.000000e+00> : vector<8x64xf32>
    %6 = tpu.matmul %5, %0, %cst {dimension_numbers = #tpu.dot_dimension_numbers<[1], [0], [0], [1], [0, 0, 1, 1], [], []>} : vector<8x24xf32>, vector<24x64xf32>, vector<8x64xf32> -> vector<8x64xf32>
    %7 = arith.addf %6, %4 : vector<8x64xf32>
    %c0_7 = arith.constant 0 : index
    %c0_8 = arith.constant 0 : index
    %8 = vector.load %arg9[%c0_7, %c0_8] : memref<128x64xf32, #tpu.memory_space<vmem>>, vector<8x64xf32>
    tpu.vector_store %arg9[%c0_7, %c0_8], %7 {strides = array<i32>} : memref<128x64xf32, #tpu.memory_space<vmem>>, vector<8x64xf32>,
    %c0_9 = arith.constant 0 : index
    %c24 = arith.constant 24 : index
    %9 = vector.load %arg0[%c0_9, %c24] : memref<8x384xf32, #tpu.memory_space<vmem>>, vector<8x24xf32>
    %cst_10 = arith.constant dense<0.000000e+00> : vector<8x64xf32>
    %10 = tpu.matmul %9, %0, %cst_10 {dimension_numbers = #tpu.dot_dimension_numbers<[1], [0], [0], [1], [0, 0, 1, 1], [], []>} : vector<8x24xf32>, vector<24x64xf32>, vector<8x64xf32> -> vector<8x64xf32>
    %11 = arith.addf %10, %4 : vector<8x64xf32>
    %c8 = arith.constant 8 : index
    %c0_11 = arith.constant 0 : index
    %12 = vector.load %arg9[%c8, %c0_11] : memref<128x64xf32, #tpu.memory_space<vmem>>, vector<8x64xf32>
    tpu.vector_store %arg9[%c8, %c0_11], %11 {strides = array<i32>} : memref<128x64xf32, #tpu.memory_space<vmem>>, vector<8x64xf32>,
    %c0_12 = arith.constant 0 : index
    %c48 = arith.constant 48 : index
    %13 = vector.load %arg0[%c0_12, %c48] : memref<8x384xf32, #tpu.memory_space<vmem>>, vector<8x24xf32>
    %cst_13 = arith.constant dense<0.000000e+00> : vector<8x64xf32>
    %14 = tpu.matmul %13, %0, %cst_13 {dimension_numbers = #tpu.dot_dimension_numbers<[1], [0], [0], [1], [0, 0, 1, 1], [], []>} : vector<8x24xf32>, vector<24x64xf32>, vector<8x64xf32> -> vector<8x64xf32>
    %15 = arith.addf %14, %4 : vector<8x64xf32>
    %c16 = arith.constant 16 : index
    %c0_14 = arith.constant 0 : index
    %16 = vector.load %arg9[%c16, %c0_14] : memref<128x64xf32, #tpu.memory_space<vmem>>, vector<8x64xf32>
    tpu.vector_store %arg9[%c16, %c0_14], %15 {strides = array<i32>} : memref<128x64xf32, #tpu.memory_space<vmem>>, vector<8x64xf32>,
    %c0_15 = arith.constant 0 : index
    %c72 = arith.constant 72 : index
    %17 = vector.load %arg0[%c0_15, %c72] : memref<8x384xf32, #tpu.memory_space<vmem>>, vector<8x24xf32>
    %cst_16 = arith.constant dense<0.000000e+00> : vector<8x64xf32>
    %18 = tpu.matmul %17, %0, %cst_16 {dimension_numbers = #tpu.dot_dimension_numbers<[1], [0], [0], [1], [0, 0, 1, 1], [], []>} : vector<8x24xf32>, vector<24x64xf32>, vector<8x64xf32> -> vector<8x64xf32>
    %19 = arith.addf %18, %4 : vector<8x64xf32>
    %c24_17 = arith.constant 24 : index
    %c0_18 = arith.constant 0 : index
    %20 = vector.load %arg9[%c24_17, %c0_18] : memref<128x64xf32, #tpu.memory_space<vmem>>, vector<8x64xf32>
    tpu.vector_store %arg9[%c24_17, %c0_18], %19 {strides = array<i32>} : memref<128x64xf32, #tpu.memory_space<vmem>>, vector<8x64xf32>,
    %c0_19 = arith.constant 0 : index
    %c96 = arith.constant 96 : index
    %21 = vector.load %arg0[%c0_19, %c96] : memref<8x384xf32, #tpu.memory_space<vmem>>, vector<8x24xf32>
    %cst_20 = arith.constant dense<0.000000e+00> : vector<8x64xf32>
    %22 = tpu.matmul %21, %0, %cst_20 {dimension_numbers = #tpu.dot_dimension_numbers<[1], [0], [0], [1], [0, 0, 1, 1], [], []>} : vector<8x24xf32>, vector<24x64xf32>, vector<8x64xf32> -> vector<8x64xf32>
    %23 = arith.addf %22, %4 : vector<8x64xf32>
    %c32 = arith.constant 32 : index
    %c0_21 = arith.constant 0 : index
    %24 = vector.load %arg9[%c32, %c0_21] : memref<128x64xf32, #tpu.memory_space<vmem>>, vector<8x64xf32>
    tpu.vector_store %arg9[%c32, %c0_21], %23 {strides = array<i32>} : memref<128x64xf32, #tpu.memory_space<vmem>>, vector<8x64xf32>,
    %c0_22 = arith.constant 0 : index
    %c120 = arith.constant 120 : index
    %25 = vector.load %arg0[%c0_22, %c120] : memref<8x384xf32, #tpu.memory_space<vmem>>, vector<8x24xf32>
    %cst_23 = arith.constant dense<0.000000e+00> : vector<8x64xf32>
    %26 = tpu.matmul %25, %0, %cst_23 {dimension_numbers = #tpu.dot_dimension_numbers<[1], [0], [0], [1], [0, 0, 1, 1], [], []>} : vector<8x24xf32>, vector<24x64xf32>, vector<8x64xf32> -> vector<8x64xf32>
    %27 = arith.addf %26, %4 : vector<8x64xf32>
    %c40 = arith.constant 40 : index
    %c0_24 = arith.constant 0 : index
    %28 = vector.load %arg9[%c40, %c0_24] : memref<128x64xf32, #tpu.memory_space<vmem>>, vector<8x64xf32>
    tpu.vector_store %arg9[%c40, %c0_24], %27 {strides = array<i32>} : memref<128x64xf32, #tpu.memory_space<vmem>>, vector<8x64xf32>,
    %c0_25 = arith.constant 0 : index
    %c144 = arith.constant 144 : index
    %29 = vector.load %arg0[%c0_25, %c144] : memref<8x384xf32, #tpu.memory_space<vmem>>, vector<8x24xf32>
    %cst_26 = arith.constant dense<0.000000e+00> : vector<8x64xf32>
    %30 = tpu.matmul %29, %0, %cst_26 {dimension_numbers = #tpu.dot_dimension_numbers<[1], [0], [0], [1], [0, 0, 1, 1], [], []>} : vector<8x24xf32>, vector<24x64xf32>, vector<8x64xf32> -> vector<8x64xf32>
    %31 = arith.addf %30, %4 : vector<8x64xf32>
    %c48_27 = arith.constant 48 : index
    %c0_28 = arith.constant 0 : index
    %32 = vector.load %arg9[%c48_27, %c0_28] : memref<128x64xf32, #tpu.memory_space<vmem>>, vector<8x64xf32>
    tpu.vector_store %arg9[%c48_27, %c0_28], %31 {strides = array<i32>} : memref<128x64xf32, #tpu.memory_space<vmem>>, vector<8x64xf32>,
    %c0_29 = arith.constant 0 : index
    %c168 = arith.constant 168 : index
    %33 = vector.load %arg0[%c0_29, %c168] : memref<8x384xf32, #tpu.memory_space<vmem>>, vector<8x24xf32>
    %cst_30 = arith.constant dense<0.000000e+00> : vector<8x64xf32>
    %34 = tpu.matmul %33, %0, %cst_30 {dimension_numbers = #tpu.dot_dimension_numbers<[1], [0], [0], [1], [0, 0, 1, 1], [], []>} : vector<8x24xf32>, vector<24x64xf32>, vector<8x64xf32> -> vector<8x64xf32>
    %35 = arith.addf %34, %4 : vector<8x64xf32>
    %c56 = arith.constant 56 : index
    %c0_31 = arith.constant 0 : index
    %36 = vector.load %arg9[%c56, %c0_31] : memref<128x64xf32, #tpu.memory_space<vmem>>, vector<8x64xf32>
    tpu.vector_store %arg9[%c56, %c0_31], %35 {strides = array<i32>} : memref<128x64xf32, #tpu.memory_space<vmem>>, vector<8x64xf32>,
    %c0_32 = arith.constant 0 : index
    %c192 = arith.constant 192 : index
    %37 = vector.load %arg0[%c0_32, %c192] : memref<8x384xf32, #tpu.memory_space<vmem>>, vector<8x24xf32>
    %cst_33 = arith.constant dense<0.000000e+00> : vector<8x64xf32>
    %38 = tpu.matmul %37, %0, %cst_33 {dimension_numbers = #tpu.dot_dimension_numbers<[1], [0], [0], [1], [0, 0, 1, 1], [], []>} : vector<8x24xf32>, vector<24x64xf32>, vector<8x64xf32> -> vector<8x64xf32>
    %39 = arith.addf %38, %4 : vector<8x64xf32>
    %c64 = arith.constant 64 : index
    %c0_34 = arith.constant 0 : index
    %40 = vector.load %arg9[%c64, %c0_34] : memref<128x64xf32, #tpu.memory_space<vmem>>, vector<8x64xf32>
    tpu.vector_store %arg9[%c64, %c0_34], %39 {strides = array<i32>} : memref<128x64xf32, #tpu.memory_space<vmem>>, vector<8x64xf32>,
    %c0_35 = arith.constant 0 : index
    %c216 = arith.constant 216 : index
    %41 = vector.load %arg0[%c0_35, %c216] : memref<8x384xf32, #tpu.memory_space<vmem>>, vector<8x24xf32>
    %cst_36 = arith.constant dense<0.000000e+00> : vector<8x64xf32>
    %42 = tpu.matmul %41, %0, %cst_36 {dimension_numbers = #tpu.dot_dimension_numbers<[1], [0], [0], [1], [0, 0, 1, 1], [], []>} : vector<8x24xf32>, vector<24x64xf32>, vector<8x64xf32> -> vector<8x64xf32>
    %43 = arith.addf %42, %4 : vector<8x64xf32>
    %c72_37 = arith.constant 72 : index
    %c0_38 = arith.constant 0 : index
    %44 = vector.load %arg9[%c72_37, %c0_38] : memref<128x64xf32, #tpu.memory_space<vmem>>, vector<8x64xf32>
    tpu.vector_store %arg9[%c72_37, %c0_38], %43 {strides = array<i32>} : memref<128x64xf32, #tpu.memory_space<vmem>>, vector<8x64xf32>,
    %c0_39 = arith.constant 0 : index
    %c240 = arith.constant 240 : index
    %45 = vector.load %arg0[%c0_39, %c240] : memref<8x384xf32, #tpu.memory_space<vmem>>, vector<8x24xf32>
    %cst_40 = arith.constant dense<0.000000e+00> : vector<8x64xf32>
    %46 = tpu.matmul %45, %0, %cst_40 {dimension_numbers = #tpu.dot_dimension_numbers<[1], [0], [0], [1], [0, 0, 1, 1], [], []>} : vector<8x24xf32>, vector<24x64xf32>, vector<8x64xf32> -> vector<8x64xf32>
    %47 = arith.addf %46, %4 : vector<8x64xf32>
    %c80 = arith.constant 80 : index
    %c0_41 = arith.constant 0 : index
    %48 = vector.load %arg9[%c80, %c0_41] : memref<128x64xf32, #tpu.memory_space<vmem>>, vector<8x64xf32>
    tpu.vector_store %arg9[%c80, %c0_41], %47 {strides = array<i32>} : memref<128x64xf32, #tpu.memory_space<vmem>>, vector<8x64xf32>,
    %c0_42 = arith.constant 0 : index
    %c264 = arith.constant 264 : index
    %49 = vector.load %arg0[%c0_42, %c264] : memref<8x384xf32, #tpu.memory_space<vmem>>, vector<8x24xf32>
    %cst_43 = arith.constant dense<0.000000e+00> : vector<8x64xf32>
    %50 = tpu.matmul %49, %0, %cst_43 {dimension_numbers = #tpu.dot_dimension_numbers<[1], [0], [0], [1], [0, 0, 1, 1], [], []>} : vector<8x24xf32>, vector<24x64xf32>, vector<8x64xf32> -> vector<8x64xf32>
    %51 = arith.addf %50, %4 : vector<8x64xf32>
    %c88 = arith.constant 88 : index
    %c0_44 = arith.constant 0 : index
    %52 = vector.load %arg9[%c88, %c0_44] : memref<128x64xf32, #tpu.memory_space<vmem>>, vector<8x64xf32>
    tpu.vector_store %arg9[%c88, %c0_44], %51 {strides = array<i32>} : memref<128x64xf32, #tpu.memory_space<vmem>>, vector<8x64xf32>,
    %c0_45 = arith.constant 0 : index
    %c288 = arith.constant 288 : index
    %53 = vector.load %arg0[%c0_45, %c288] : memref<8x384xf32, #tpu.memory_space<vmem>>, vector<8x24xf32>
    %cst_46 = arith.constant dense<0.000000e+00> : vector<8x64xf32>
    %54 = tpu.matmul %53, %0, %cst_46 {dimension_numbers = #tpu.dot_dimension_numbers<[1], [0], [0], [1], [0, 0, 1, 1], [], []>} : vector<8x24xf32>, vector<24x64xf32>, vector<8x64xf32> -> vector<8x64xf32>
    %55 = arith.addf %54, %4 : vector<8x64xf32>
    %c96_47 = arith.constant 96 : index
    %c0_48 = arith.constant 0 : index
    %56 = vector.load %arg9[%c96_47, %c0_48] : memref<128x64xf32, #tpu.memory_space<vmem>>, vector<8x64xf32>
    tpu.vector_store %arg9[%c96_47, %c0_48], %55 {strides = array<i32>} : memref<128x64xf32, #tpu.memory_space<vmem>>, vector<8x64xf32>,
    %c0_49 = arith.constant 0 : index
    %c312 = arith.constant 312 : index
    %57 = vector.load %arg0[%c0_49, %c312] : memref<8x384xf32, #tpu.memory_space<vmem>>, vector<8x24xf32>
    %cst_50 = arith.constant dense<0.000000e+00> : vector<8x64xf32>
    %58 = tpu.matmul %57, %0, %cst_50 {dimension_numbers = #tpu.dot_dimension_numbers<[1], [0], [0], [1], [0, 0, 1, 1], [], []>} : vector<8x24xf32>, vector<24x64xf32>, vector<8x64xf32> -> vector<8x64xf32>
    %59 = arith.addf %58, %4 : vector<8x64xf32>
    %c104 = arith.constant 104 : index
    %c0_51 = arith.constant 0 : index
    %60 = vector.load %arg9[%c104, %c0_51] : memref<128x64xf32, #tpu.memory_space<vmem>>, vector<8x64xf32>
    tpu.vector_store %arg9[%c104, %c0_51], %59 {strides = array<i32>} : memref<128x64xf32, #tpu.memory_space<vmem>>, vector<8x64xf32>,
    %c0_52 = arith.constant 0 : index
    %c336 = arith.constant 336 : index
    %61 = vector.load %arg0[%c0_52, %c336] : memref<8x384xf32, #tpu.memory_space<vmem>>, vector<8x24xf32>
    %cst_53 = arith.constant dense<0.000000e+00> : vector<8x64xf32>
    %62 = tpu.matmul %61, %0, %cst_53 {dimension_numbers = #tpu.dot_dimension_numbers<[1], [0], [0], [1], [0, 0, 1, 1], [], []>} : vector<8x24xf32>, vector<24x64xf32>, vector<8x64xf32> -> vector<8x64xf32>
    %63 = arith.addf %62, %4 : vector<8x64xf32>
    %c112 = arith.constant 112 : index
    %c0_54 = arith.constant 0 : index
    %64 = vector.load %arg9[%c112, %c0_54] : memref<128x64xf32, #tpu.memory_space<vmem>>, vector<8x64xf32>
    tpu.vector_store %arg9[%c112, %c0_54], %63 {strides = array<i32>} : memref<128x64xf32, #tpu.memory_space<vmem>>, vector<8x64xf32>,
    %c0_55 = arith.constant 0 : index
    %c360 = arith.constant 360 : index
    %65 = vector.load %arg0[%c0_55, %c360] : memref<8x384xf32, #tpu.memory_space<vmem>>, vector<8x24xf32>
    %cst_56 = arith.constant dense<0.000000e+00> : vector<8x64xf32>
    %66 = tpu.matmul %65, %0, %cst_56 {dimension_numbers = #tpu.dot_dimension_numbers<[1], [0], [0], [1], [0, 0, 1, 1], [], []>} : vector<8x24xf32>, vector<24x64xf32>, vector<8x64xf32> -> vector<8x64xf32>
    %67 = arith.addf %66, %4 : vector<8x64xf32>
    %c120_57 = arith.constant 120 : index
    %c0_58 = arith.constant 0 : index
    %68 = vector.load %arg9[%c120_57, %c0_58] : memref<128x64xf32, #tpu.memory_space<vmem>>, vector<8x64xf32>
    tpu.vector_store %arg9[%c120_57, %c0_58], %67 {strides = array<i32>} : memref<128x64xf32, #tpu.memory_space<vmem>>, vector<8x64xf32>,
    %69 = tpu.iota {dimensions = array<i32: 1>} : vector<8x64xi32>
    %c32_i32 = arith.constant 32 : i32
    %70 = vector.broadcast %c32_i32 : i32 to vector<8x64xi32>
    %71 = arith.cmpi sge, %69, %70 : vector<8x64xi32>
    %c48_i32 = arith.constant 48 : i32
    %72 = vector.broadcast %c48_i32 : i32 to vector<8x64xi32>
    %73 = arith.cmpi slt, %69, %72 : vector<8x64xi32>
    %74 = arith.andi %71, %73 : vector<8x64xi1>
    %cst_59 = arith.constant 1.000000e+00 : f32
    %cst_60 = arith.constant 5.000000e-01 : f32
    %75 = vector.broadcast %cst_59 : f32 to vector<8x64xf32>
    %76 = vector.broadcast %cst_60 : f32 to vector<8x64xf32>
    %77 = arith.select %74, %75, %76 : vector<8x64xi1>, vector<8x64xf32>
    %cst_61 = arith.constant 0.000000e+00 : f32
    %cst_62 = arith.constant 5.000000e-01 : f32
    %78 = vector.broadcast %cst_61 : f32 to vector<8x64xf32>
    %79 = vector.broadcast %cst_62 : f32 to vector<8x64xf32>
    %80 = arith.select %74, %78, %79 : vector<8x64xi1>, vector<8x64xf32>
    %cst_63 = arith.constant 0.000000e+00 : f32
    %81 = vector.broadcast %cst_63 : f32 to vector<8x16xf32>
    %cst_64 = arith.constant 0.000000e+00 : f32
    %82 = vector.broadcast %cst_64 : f32 to vector<8x16xf32>
    %c0_65 = arith.constant 0 : index
    %c0_66 = arith.constant 0 : index
    %83 = vector.load %arg9[%c0_65, %c0_66] : memref<128x64xf32, #tpu.memory_space<vmem>>, vector<8x64xf32>
    %cst_67 = arith.constant dense<0.000000e+00> : vector<8x64xf32>
    %84 = tpu.matmul %81, %1, %cst_67 {dimension_numbers = #tpu.dot_dimension_numbers<[1], [0], [0], [1], [0, 0, 1, 1], [], []>} : vector<8x16xf32>, vector<16x64xf32>, vector<8x64xf32> -> vector<8x64xf32>
    %85 = arith.addf %83, %84 : vector<8x64xf32>
    %86 = arith.mulf %85, %77 : vector<8x64xf32>
    %87 = math.tanh %86 : vector<8x64xf32>
    %88 = arith.mulf %87, %77 : vector<8x64xf32>
    %89 = arith.addf %88, %80 : vector<8x64xf32>
    %90 = vector.extract_strided_slice %89 {offsets = [0, 0], sizes = [8, 16], strides = [1, 1]} : vector<8x64xf32> to vector<8x16xf32>
    %91 = vector.extract_strided_slice %89 {offsets = [0, 16], sizes = [8, 16], strides = [1, 1]} : vector<8x64xf32> to vector<8x16xf32>
    %92 = vector.extract_strided_slice %89 {offsets = [0, 32], sizes = [8, 16], strides = [1, 1]} : vector<8x64xf32> to vector<8x16xf32>
    %93 = vector.extract_strided_slice %89 {offsets = [0, 48], sizes = [8, 16], strides = [1, 1]} : vector<8x64xf32> to vector<8x16xf32>
    %94 = arith.mulf %91, %82 : vector<8x16xf32>
    %95 = arith.mulf %90, %92 : vector<8x16xf32>
    %96 = arith.addf %94, %95 : vector<8x16xf32>
    %97 = math.tanh %96 : vector<8x16xf32>
    %98 = arith.mulf %93, %97 : vector<8x16xf32>
    %c0_68 = arith.constant 0 : index
    %c0_69 = arith.constant 0 : index
    %99 = vector.load %arg10[%c0_68, %c0_69] : memref<8x256xf32, #tpu.memory_space<vmem>>, vector<8x16xf32>
    tpu.vector_store %arg10[%c0_68, %c0_69], %98 {strides = array<i32>} : memref<8x256xf32, #tpu.memory_space<vmem>>, vector<8x16xf32>,
    %c8_70 = arith.constant 8 : index
    %c0_71 = arith.constant 0 : index
    %100 = vector.load %arg9[%c8_70, %c0_71] : memref<128x64xf32, #tpu.memory_space<vmem>>, vector<8x64xf32>
    %cst_72 = arith.constant dense<0.000000e+00> : vector<8x64xf32>
    %101 = tpu.matmul %98, %1, %cst_72 {dimension_numbers = #tpu.dot_dimension_numbers<[1], [0], [0], [1], [0, 0, 1, 1], [], []>} : vector<8x16xf32>, vector<16x64xf32>, vector<8x64xf32> -> vector<8x64xf32>
    %102 = arith.addf %100, %101 : vector<8x64xf32>
    %103 = arith.mulf %102, %77 : vector<8x64xf32>
    %104 = math.tanh %103 : vector<8x64xf32>
    %105 = arith.mulf %104, %77 : vector<8x64xf32>
    %106 = arith.addf %105, %80 : vector<8x64xf32>
    %107 = vector.extract_strided_slice %106 {offsets = [0, 0], sizes = [8, 16], strides = [1, 1]} : vector<8x64xf32> to vector<8x16xf32>
    %108 = vector.extract_strided_slice %106 {offsets = [0, 16], sizes = [8, 16], strides = [1, 1]} : vector<8x64xf32> to vector<8x16xf32>
    %109 = vector.extract_strided_slice %106 {offsets = [0, 32], sizes = [8, 16], strides = [1, 1]} : vector<8x64xf32> to vector<8x16xf32>
    %110 = vector.extract_strided_slice %106 {offsets = [0, 48], sizes = [8, 16], strides = [1, 1]} : vector<8x64xf32> to vector<8x16xf32>
    %111 = arith.mulf %108, %96 : vector<8x16xf32>
    %112 = arith.mulf %107, %109 : vector<8x16xf32>
    %113 = arith.addf %111, %112 : vector<8x16xf32>
    %114 = math.tanh %113 : vector<8x16xf32>
    %115 = arith.mulf %110, %114 : vector<8x16xf32>
    %c0_73 = arith.constant 0 : index
    %c16_74 = arith.constant 16 : index
    %116 = vector.load %arg10[%c0_73, %c16_74] : memref<8x256xf32, #tpu.memory_space<vmem>>, vector<8x16xf32>
    tpu.vector_store %arg10[%c0_73, %c16_74], %115 {strides = array<i32>} : memref<8x256xf32, #tpu.memory_space<vmem>>, vector<8x16xf32>,
    %c16_75 = arith.constant 16 : index
    %c0_76 = arith.constant 0 : index
    %117 = vector.load %arg9[%c16_75, %c0_76] : memref<128x64xf32, #tpu.memory_space<vmem>>, vector<8x64xf32>
    %cst_77 = arith.constant dense<0.000000e+00> : vector<8x64xf32>
    %118 = tpu.matmul %115, %1, %cst_77 {dimension_numbers = #tpu.dot_dimension_numbers<[1], [0], [0], [1], [0, 0, 1, 1], [], []>} : vector<8x16xf32>, vector<16x64xf32>, vector<8x64xf32> -> vector<8x64xf32>
    %119 = arith.addf %117, %118 : vector<8x64xf32>
    %120 = arith.mulf %119, %77 : vector<8x64xf32>
    %121 = math.tanh %120 : vector<8x64xf32>
    %122 = arith.mulf %121, %77 : vector<8x64xf32>
    %123 = arith.addf %122, %80 : vector<8x64xf32>
    %124 = vector.extract_strided_slice %123 {offsets = [0, 0], sizes = [8, 16], strides = [1, 1]} : vector<8x64xf32> to vector<8x16xf32>
    %125 = vector.extract_strided_slice %123 {offsets = [0, 16], sizes = [8, 16], strides = [1, 1]} : vector<8x64xf32> to vector<8x16xf32>
    %126 = vector.extract_strided_slice %123 {offsets = [0, 32], sizes = [8, 16], strides = [1, 1]} : vector<8x64xf32> to vector<8x16xf32>
    %127 = vector.extract_strided_slice %123 {offsets = [0, 48], sizes = [8, 16], strides = [1, 1]} : vector<8x64xf32> to vector<8x16xf32>
    %128 = arith.mulf %125, %113 : vector<8x16xf32>
    %129 = arith.mulf %124, %126 : vector<8x16xf32>
    %130 = arith.addf %128, %129 : vector<8x16xf32>
    %131 = math.tanh %130 : vector<8x16xf32>
    %132 = arith.mulf %127, %131 : vector<8x16xf32>
    %c0_78 = arith.constant 0 : index
    %c32_79 = arith.constant 32 : index
    %133 = vector.load %arg10[%c0_78, %c32_79] : memref<8x256xf32, #tpu.memory_space<vmem>>, vector<8x16xf32>
    tpu.vector_store %arg10[%c0_78, %c32_79], %132 {strides = array<i32>} : memref<8x256xf32, #tpu.memory_space<vmem>>, vector<8x16xf32>,
    %c24_80 = arith.constant 24 : index
    %c0_81 = arith.constant 0 : index
    %134 = vector.load %arg9[%c24_80, %c0_81] : memref<128x64xf32, #tpu.memory_space<vmem>>, vector<8x64xf32>
    %cst_82 = arith.constant dense<0.000000e+00> : vector<8x64xf32>
    %135 = tpu.matmul %132, %1, %cst_82 {dimension_numbers = #tpu.dot_dimension_numbers<[1], [0], [0], [1], [0, 0, 1, 1], [], []>} : vector<8x16xf32>, vector<16x64xf32>, vector<8x64xf32> -> vector<8x64xf32>
    %136 = arith.addf %134, %135 : vector<8x64xf32>
    %137 = arith.mulf %136, %77 : vector<8x64xf32>
    %138 = math.tanh %137 : vector<8x64xf32>
    %139 = arith.mulf %138, %77 : vector<8x64xf32>
    %140 = arith.addf %139, %80 : vector<8x64xf32>
    %141 = vector.extract_strided_slice %140 {offsets = [0, 0], sizes = [8, 16], strides = [1, 1]} : vector<8x64xf32> to vector<8x16xf32>
    %142 = vector.extract_strided_slice %140 {offsets = [0, 16], sizes = [8, 16], strides = [1, 1]} : vector<8x64xf32> to vector<8x16xf32>
    %143 = vector.extract_strided_slice %140 {offsets = [0, 32], sizes = [8, 16], strides = [1, 1]} : vector<8x64xf32> to vector<8x16xf32>
    %144 = vector.extract_strided_slice %140 {offsets = [0, 48], sizes = [8, 16], strides = [1, 1]} : vector<8x64xf32> to vector<8x16xf32>
    %145 = arith.mulf %142, %130 : vector<8x16xf32>
    %146 = arith.mulf %141, %143 : vector<8x16xf32>
    %147 = arith.addf %145, %146 : vector<8x16xf32>
    %148 = math.tanh %147 : vector<8x16xf32>
    %149 = arith.mulf %144, %148 : vector<8x16xf32>
    %c0_83 = arith.constant 0 : index
    %c48_84 = arith.constant 48 : index
    %150 = vector.load %arg10[%c0_83, %c48_84] : memref<8x256xf32, #tpu.memory_space<vmem>>, vector<8x16xf32>
    tpu.vector_store %arg10[%c0_83, %c48_84], %149 {strides = array<i32>} : memref<8x256xf32, #tpu.memory_space<vmem>>, vector<8x16xf32>,
    %c32_85 = arith.constant 32 : index
    %c0_86 = arith.constant 0 : index
    %151 = vector.load %arg9[%c32_85, %c0_86] : memref<128x64xf32, #tpu.memory_space<vmem>>, vector<8x64xf32>
    %cst_87 = arith.constant dense<0.000000e+00> : vector<8x64xf32>
    %152 = tpu.matmul %149, %1, %cst_87 {dimension_numbers = #tpu.dot_dimension_numbers<[1], [0], [0], [1], [0, 0, 1, 1], [], []>} : vector<8x16xf32>, vector<16x64xf32>, vector<8x64xf32> -> vector<8x64xf32>
    %153 = arith.addf %151, %152 : vector<8x64xf32>
    %154 = arith.mulf %153, %77 : vector<8x64xf32>
    %155 = math.tanh %154 : vector<8x64xf32>
    %156 = arith.mulf %155, %77 : vector<8x64xf32>
    %157 = arith.addf %156, %80 : vector<8x64xf32>
    %158 = vector.extract_strided_slice %157 {offsets = [0, 0], sizes = [8, 16], strides = [1, 1]} : vector<8x64xf32> to vector<8x16xf32>
    %159 = vector.extract_strided_slice %157 {offsets = [0, 16], sizes = [8, 16], strides = [1, 1]} : vector<8x64xf32> to vector<8x16xf32>
    %160 = vector.extract_strided_slice %157 {offsets = [0, 32], sizes = [8, 16], strides = [1, 1]} : vector<8x64xf32> to vector<8x16xf32>
    %161 = vector.extract_strided_slice %157 {offsets = [0, 48], sizes = [8, 16], strides = [1, 1]} : vector<8x64xf32> to vector<8x16xf32>
    %162 = arith.mulf %159, %147 : vector<8x16xf32>
    %163 = arith.mulf %158, %160 : vector<8x16xf32>
    %164 = arith.addf %162, %163 : vector<8x16xf32>
    %165 = math.tanh %164 : vector<8x16xf32>
    %166 = arith.mulf %161, %165 : vector<8x16xf32>
    %c0_88 = arith.constant 0 : index
    %c64_89 = arith.constant 64 : index
    %167 = vector.load %arg10[%c0_88, %c64_89] : memref<8x256xf32, #tpu.memory_space<vmem>>, vector<8x16xf32>
    tpu.vector_store %arg10[%c0_88, %c64_89], %166 {strides = array<i32>} : memref<8x256xf32, #tpu.memory_space<vmem>>, vector<8x16xf32>,
    %c40_90 = arith.constant 40 : index
    %c0_91 = arith.constant 0 : index
    %168 = vector.load %arg9[%c40_90, %c0_91] : memref<128x64xf32, #tpu.memory_space<vmem>>, vector<8x64xf32>
    %cst_92 = arith.constant dense<0.000000e+00> : vector<8x64xf32>
    %169 = tpu.matmul %166, %1, %cst_92 {dimension_numbers = #tpu.dot_dimension_numbers<[1], [0], [0], [1], [0, 0, 1, 1], [], []>} : vector<8x16xf32>, vector<16x64xf32>, vector<8x64xf32> -> vector<8x64xf32>
    %170 = arith.addf %168, %169 : vector<8x64xf32>
    %171 = arith.mulf %170, %77 : vector<8x64xf32>
    %172 = math.tanh %171 : vector<8x64xf32>
    %173 = arith.mulf %172, %77 : vector<8x64xf32>
    %174 = arith.addf %173, %80 : vector<8x64xf32>
    %175 = vector.extract_strided_slice %174 {offsets = [0, 0], sizes = [8, 16], strides = [1, 1]} : vector<8x64xf32> to vector<8x16xf32>
    %176 = vector.extract_strided_slice %174 {offsets = [0, 16], sizes = [8, 16], strides = [1, 1]} : vector<8x64xf32> to vector<8x16xf32>
    %177 = vector.extract_strided_slice %174 {offsets = [0, 32], sizes = [8, 16], strides = [1, 1]} : vector<8x64xf32> to vector<8x16xf32>
    %178 = vector.extract_strided_slice %174 {offsets = [0, 48], sizes = [8, 16], strides = [1, 1]} : vector<8x64xf32> to vector<8x16xf32>
    %179 = arith.mulf %176, %164 : vector<8x16xf32>
    %180 = arith.mulf %175, %177 : vector<8x16xf32>
    %181 = arith.addf %179, %180 : vector<8x16xf32>
    %182 = math.tanh %181 : vector<8x16xf32>
    %183 = arith.mulf %178, %182 : vector<8x16xf32>
    %c0_93 = arith.constant 0 : index
    %c80_94 = arith.constant 80 : index
    %184 = vector.load %arg10[%c0_93, %c80_94] : memref<8x256xf32, #tpu.memory_space<vmem>>, vector<8x16xf32>
    tpu.vector_store %arg10[%c0_93, %c80_94], %183 {strides = array<i32>} : memref<8x256xf32, #tpu.memory_space<vmem>>, vector<8x16xf32>,
    %c48_95 = arith.constant 48 : index
    %c0_96 = arith.constant 0 : index
    %185 = vector.load %arg9[%c48_95, %c0_96] : memref<128x64xf32, #tpu.memory_space<vmem>>, vector<8x64xf32>
    %cst_97 = arith.constant dense<0.000000e+00> : vector<8x64xf32>
    %186 = tpu.matmul %183, %1, %cst_97 {dimension_numbers = #tpu.dot_dimension_numbers<[1], [0], [0], [1], [0, 0, 1, 1], [], []>} : vector<8x16xf32>, vector<16x64xf32>, vector<8x64xf32> -> vector<8x64xf32>
    %187 = arith.addf %185, %186 : vector<8x64xf32>
    %188 = arith.mulf %187, %77 : vector<8x64xf32>
    %189 = math.tanh %188 : vector<8x64xf32>
    %190 = arith.mulf %189, %77 : vector<8x64xf32>
    %191 = arith.addf %190, %80 : vector<8x64xf32>
    %192 = vector.extract_strided_slice %191 {offsets = [0, 0], sizes = [8, 16], strides = [1, 1]} : vector<8x64xf32> to vector<8x16xf32>
    %193 = vector.extract_strided_slice %191 {offsets = [0, 16], sizes = [8, 16], strides = [1, 1]} : vector<8x64xf32> to vector<8x16xf32>
    %194 = vector.extract_strided_slice %191 {offsets = [0, 32], sizes = [8, 16], strides = [1, 1]} : vector<8x64xf32> to vector<8x16xf32>
    %195 = vector.extract_strided_slice %191 {offsets = [0, 48], sizes = [8, 16], strides = [1, 1]} : vector<8x64xf32> to vector<8x16xf32>
    %196 = arith.mulf %193, %181 : vector<8x16xf32>
    %197 = arith.mulf %192, %194 : vector<8x16xf32>
    %198 = arith.addf %196, %197 : vector<8x16xf32>
    %199 = math.tanh %198 : vector<8x16xf32>
    %200 = arith.mulf %195, %199 : vector<8x16xf32>
    %c0_98 = arith.constant 0 : index
    %c96_99 = arith.constant 96 : index
    %201 = vector.load %arg10[%c0_98, %c96_99] : memref<8x256xf32, #tpu.memory_space<vmem>>, vector<8x16xf32>
    tpu.vector_store %arg10[%c0_98, %c96_99], %200 {strides = array<i32>} : memref<8x256xf32, #tpu.memory_space<vmem>>, vector<8x16xf32>,
    %c56_100 = arith.constant 56 : index
    %c0_101 = arith.constant 0 : index
    %202 = vector.load %arg9[%c56_100, %c0_101] : memref<128x64xf32, #tpu.memory_space<vmem>>, vector<8x64xf32>
    %cst_102 = arith.constant dense<0.000000e+00> : vector<8x64xf32>
    %203 = tpu.matmul %200, %1, %cst_102 {dimension_numbers = #tpu.dot_dimension_numbers<[1], [0], [0], [1], [0, 0, 1, 1], [], []>} : vector<8x16xf32>, vector<16x64xf32>, vector<8x64xf32> -> vector<8x64xf32>
    %204 = arith.addf %202, %203 : vector<8x64xf32>
    %205 = arith.mulf %204, %77 : vector<8x64xf32>
    %206 = math.tanh %205 : vector<8x64xf32>
    %207 = arith.mulf %206, %77 : vector<8x64xf32>
    %208 = arith.addf %207, %80 : vector<8x64xf32>
    %209 = vector.extract_strided_slice %208 {offsets = [0, 0], sizes = [8, 16], strides = [1, 1]} : vector<8x64xf32> to vector<8x16xf32>
    %210 = vector.extract_strided_slice %208 {offsets = [0, 16], sizes = [8, 16], strides = [1, 1]} : vector<8x64xf32> to vector<8x16xf32>
    %211 = vector.extract_strided_slice %208 {offsets = [0, 32], sizes = [8, 16], strides = [1, 1]} : vector<8x64xf32> to vector<8x16xf32>
    %212 = vector.extract_strided_slice %208 {offsets = [0, 48], sizes = [8, 16], strides = [1, 1]} : vector<8x64xf32> to vector<8x16xf32>
    %213 = arith.mulf %210, %198 : vector<8x16xf32>
    %214 = arith.mulf %209, %211 : vector<8x16xf32>
    %215 = arith.addf %213, %214 : vector<8x16xf32>
    %216 = math.tanh %215 : vector<8x16xf32>
    %217 = arith.mulf %212, %216 : vector<8x16xf32>
    %c0_103 = arith.constant 0 : index
    %c112_104 = arith.constant 112 : index
    %218 = vector.load %arg10[%c0_103, %c112_104] : memref<8x256xf32, #tpu.memory_space<vmem>>, vector<8x16xf32>
    tpu.vector_store %arg10[%c0_103, %c112_104], %217 {strides = array<i32>} : memref<8x256xf32, #tpu.memory_space<vmem>>, vector<8x16xf32>,
    %c64_105 = arith.constant 64 : index
    %c0_106 = arith.constant 0 : index
    %219 = vector.load %arg9[%c64_105, %c0_106] : memref<128x64xf32, #tpu.memory_space<vmem>>, vector<8x64xf32>
    %cst_107 = arith.constant dense<0.000000e+00> : vector<8x64xf32>
    %220 = tpu.matmul %217, %1, %cst_107 {dimension_numbers = #tpu.dot_dimension_numbers<[1], [0], [0], [1], [0, 0, 1, 1], [], []>} : vector<8x16xf32>, vector<16x64xf32>, vector<8x64xf32> -> vector<8x64xf32>
    %221 = arith.addf %219, %220 : vector<8x64xf32>
    %222 = arith.mulf %221, %77 : vector<8x64xf32>
    %223 = math.tanh %222 : vector<8x64xf32>
    %224 = arith.mulf %223, %77 : vector<8x64xf32>
    %225 = arith.addf %224, %80 : vector<8x64xf32>
    %226 = vector.extract_strided_slice %225 {offsets = [0, 0], sizes = [8, 16], strides = [1, 1]} : vector<8x64xf32> to vector<8x16xf32>
    %227 = vector.extract_strided_slice %225 {offsets = [0, 16], sizes = [8, 16], strides = [1, 1]} : vector<8x64xf32> to vector<8x16xf32>
    %228 = vector.extract_strided_slice %225 {offsets = [0, 32], sizes = [8, 16], strides = [1, 1]} : vector<8x64xf32> to vector<8x16xf32>
    %229 = vector.extract_strided_slice %225 {offsets = [0, 48], sizes = [8, 16], strides = [1, 1]} : vector<8x64xf32> to vector<8x16xf32>
    %230 = arith.mulf %227, %215 : vector<8x16xf32>
    %231 = arith.mulf %226, %228 : vector<8x16xf32>
    %232 = arith.addf %230, %231 : vector<8x16xf32>
    %233 = math.tanh %232 : vector<8x16xf32>
    %234 = arith.mulf %229, %233 : vector<8x16xf32>
    %c0_108 = arith.constant 0 : index
    %c128 = arith.constant 128 : index
    %235 = vector.load %arg10[%c0_108, %c128] : memref<8x256xf32, #tpu.memory_space<vmem>>, vector<8x16xf32>
    tpu.vector_store %arg10[%c0_108, %c128], %234 {strides = array<i32>} : memref<8x256xf32, #tpu.memory_space<vmem>>, vector<8x16xf32>,
    %c72_109 = arith.constant 72 : index
    %c0_110 = arith.constant 0 : index
    %236 = vector.load %arg9[%c72_109, %c0_110] : memref<128x64xf32, #tpu.memory_space<vmem>>, vector<8x64xf32>
    %cst_111 = arith.constant dense<0.000000e+00> : vector<8x64xf32>
    %237 = tpu.matmul %234, %1, %cst_111 {dimension_numbers = #tpu.dot_dimension_numbers<[1], [0], [0], [1], [0, 0, 1, 1], [], []>} : vector<8x16xf32>, vector<16x64xf32>, vector<8x64xf32> -> vector<8x64xf32>
    %238 = arith.addf %236, %237 : vector<8x64xf32>
    %239 = arith.mulf %238, %77 : vector<8x64xf32>
    %240 = math.tanh %239 : vector<8x64xf32>
    %241 = arith.mulf %240, %77 : vector<8x64xf32>
    %242 = arith.addf %241, %80 : vector<8x64xf32>
    %243 = vector.extract_strided_slice %242 {offsets = [0, 0], sizes = [8, 16], strides = [1, 1]} : vector<8x64xf32> to vector<8x16xf32>
    %244 = vector.extract_strided_slice %242 {offsets = [0, 16], sizes = [8, 16], strides = [1, 1]} : vector<8x64xf32> to vector<8x16xf32>
    %245 = vector.extract_strided_slice %242 {offsets = [0, 32], sizes = [8, 16], strides = [1, 1]} : vector<8x64xf32> to vector<8x16xf32>
    %246 = vector.extract_strided_slice %242 {offsets = [0, 48], sizes = [8, 16], strides = [1, 1]} : vector<8x64xf32> to vector<8x16xf32>
    %247 = arith.mulf %244, %232 : vector<8x16xf32>
    %248 = arith.mulf %243, %245 : vector<8x16xf32>
    %249 = arith.addf %247, %248 : vector<8x16xf32>
    %250 = math.tanh %249 : vector<8x16xf32>
    %251 = arith.mulf %246, %250 : vector<8x16xf32>
    %c0_112 = arith.constant 0 : index
    %c144_113 = arith.constant 144 : index
    %252 = vector.load %arg10[%c0_112, %c144_113] : memref<8x256xf32, #tpu.memory_space<vmem>>, vector<8x16xf32>
    tpu.vector_store %arg10[%c0_112, %c144_113], %251 {strides = array<i32>} : memref<8x256xf32, #tpu.memory_space<vmem>>, vector<8x16xf32>,
    %c80_114 = arith.constant 80 : index
    %c0_115 = arith.constant 0 : index
    %253 = vector.load %arg9[%c80_114, %c0_115] : memref<128x64xf32, #tpu.memory_space<vmem>>, vector<8x64xf32>
    %cst_116 = arith.constant dense<0.000000e+00> : vector<8x64xf32>
    %254 = tpu.matmul %251, %1, %cst_116 {dimension_numbers = #tpu.dot_dimension_numbers<[1], [0], [0], [1], [0, 0, 1, 1], [], []>} : vector<8x16xf32>, vector<16x64xf32>, vector<8x64xf32> -> vector<8x64xf32>
    %255 = arith.addf %253, %254 : vector<8x64xf32>
    %256 = arith.mulf %255, %77 : vector<8x64xf32>
    %257 = math.tanh %256 : vector<8x64xf32>
    %258 = arith.mulf %257, %77 : vector<8x64xf32>
    %259 = arith.addf %258, %80 : vector<8x64xf32>
    %260 = vector.extract_strided_slice %259 {offsets = [0, 0], sizes = [8, 16], strides = [1, 1]} : vector<8x64xf32> to vector<8x16xf32>
    %261 = vector.extract_strided_slice %259 {offsets = [0, 16], sizes = [8, 16], strides = [1, 1]} : vector<8x64xf32> to vector<8x16xf32>
    %262 = vector.extract_strided_slice %259 {offsets = [0, 32], sizes = [8, 16], strides = [1, 1]} : vector<8x64xf32> to vector<8x16xf32>
    %263 = vector.extract_strided_slice %259 {offsets = [0, 48], sizes = [8, 16], strides = [1, 1]} : vector<8x64xf32> to vector<8x16xf32>
    %264 = arith.mulf %261, %249 : vector<8x16xf32>
    %265 = arith.mulf %260, %262 : vector<8x16xf32>
    %266 = arith.addf %264, %265 : vector<8x16xf32>
    %267 = math.tanh %266 : vector<8x16xf32>
    %268 = arith.mulf %263, %267 : vector<8x16xf32>
    %c0_117 = arith.constant 0 : index
    %c160 = arith.constant 160 : index
    %269 = vector.load %arg10[%c0_117, %c160] : memref<8x256xf32, #tpu.memory_space<vmem>>, vector<8x16xf32>
    tpu.vector_store %arg10[%c0_117, %c160], %268 {strides = array<i32>} : memref<8x256xf32, #tpu.memory_space<vmem>>, vector<8x16xf32>,
    %c88_118 = arith.constant 88 : index
    %c0_119 = arith.constant 0 : index
    %270 = vector.load %arg9[%c88_118, %c0_119] : memref<128x64xf32, #tpu.memory_space<vmem>>, vector<8x64xf32>
    %cst_120 = arith.constant dense<0.000000e+00> : vector<8x64xf32>
    %271 = tpu.matmul %268, %1, %cst_120 {dimension_numbers = #tpu.dot_dimension_numbers<[1], [0], [0], [1], [0, 0, 1, 1], [], []>} : vector<8x16xf32>, vector<16x64xf32>, vector<8x64xf32> -> vector<8x64xf32>
    %272 = arith.addf %270, %271 : vector<8x64xf32>
    %273 = arith.mulf %272, %77 : vector<8x64xf32>
    %274 = math.tanh %273 : vector<8x64xf32>
    %275 = arith.mulf %274, %77 : vector<8x64xf32>
    %276 = arith.addf %275, %80 : vector<8x64xf32>
    %277 = vector.extract_strided_slice %276 {offsets = [0, 0], sizes = [8, 16], strides = [1, 1]} : vector<8x64xf32> to vector<8x16xf32>
    %278 = vector.extract_strided_slice %276 {offsets = [0, 16], sizes = [8, 16], strides = [1, 1]} : vector<8x64xf32> to vector<8x16xf32>
    %279 = vector.extract_strided_slice %276 {offsets = [0, 32], sizes = [8, 16], strides = [1, 1]} : vector<8x64xf32> to vector<8x16xf32>
    %280 = vector.extract_strided_slice %276 {offsets = [0, 48], sizes = [8, 16], strides = [1, 1]} : vector<8x64xf32> to vector<8x16xf32>
    %281 = arith.mulf %278, %266 : vector<8x16xf32>
    %282 = arith.mulf %277, %279 : vector<8x16xf32>
    %283 = arith.addf %281, %282 : vector<8x16xf32>
    %284 = math.tanh %283 : vector<8x16xf32>
    %285 = arith.mulf %280, %284 : vector<8x16xf32>
    %c0_121 = arith.constant 0 : index
    %c176 = arith.constant 176 : index
    %286 = vector.load %arg10[%c0_121, %c176] : memref<8x256xf32, #tpu.memory_space<vmem>>, vector<8x16xf32>
    tpu.vector_store %arg10[%c0_121, %c176], %285 {strides = array<i32>} : memref<8x256xf32, #tpu.memory_space<vmem>>, vector<8x16xf32>,
    %c96_122 = arith.constant 96 : index
    %c0_123 = arith.constant 0 : index
    %287 = vector.load %arg9[%c96_122, %c0_123] : memref<128x64xf32, #tpu.memory_space<vmem>>, vector<8x64xf32>
    %cst_124 = arith.constant dense<0.000000e+00> : vector<8x64xf32>
    %288 = tpu.matmul %285, %1, %cst_124 {dimension_numbers = #tpu.dot_dimension_numbers<[1], [0], [0], [1], [0, 0, 1, 1], [], []>} : vector<8x16xf32>, vector<16x64xf32>, vector<8x64xf32> -> vector<8x64xf32>
    %289 = arith.addf %287, %288 : vector<8x64xf32>
    %290 = arith.mulf %289, %77 : vector<8x64xf32>
    %291 = math.tanh %290 : vector<8x64xf32>
    %292 = arith.mulf %291, %77 : vector<8x64xf32>
    %293 = arith.addf %292, %80 : vector<8x64xf32>
    %294 = vector.extract_strided_slice %293 {offsets = [0, 0], sizes = [8, 16], strides = [1, 1]} : vector<8x64xf32> to vector<8x16xf32>
    %295 = vector.extract_strided_slice %293 {offsets = [0, 16], sizes = [8, 16], strides = [1, 1]} : vector<8x64xf32> to vector<8x16xf32>
    %296 = vector.extract_strided_slice %293 {offsets = [0, 32], sizes = [8, 16], strides = [1, 1]} : vector<8x64xf32> to vector<8x16xf32>
    %297 = vector.extract_strided_slice %293 {offsets = [0, 48], sizes = [8, 16], strides = [1, 1]} : vector<8x64xf32> to vector<8x16xf32>
    %298 = arith.mulf %295, %283 : vector<8x16xf32>
    %299 = arith.mulf %294, %296 : vector<8x16xf32>
    %300 = arith.addf %298, %299 : vector<8x16xf32>
    %301 = math.tanh %300 : vector<8x16xf32>
    %302 = arith.mulf %297, %301 : vector<8x16xf32>
    %c0_125 = arith.constant 0 : index
    %c192_126 = arith.constant 192 : index
    %303 = vector.load %arg10[%c0_125, %c192_126] : memref<8x256xf32, #tpu.memory_space<vmem>>, vector<8x16xf32>
    tpu.vector_store %arg10[%c0_125, %c192_126], %302 {strides = array<i32>} : memref<8x256xf32, #tpu.memory_space<vmem>>, vector<8x16xf32>,
    %c104_127 = arith.constant 104 : index
    %c0_128 = arith.constant 0 : index
    %304 = vector.load %arg9[%c104_127, %c0_128] : memref<128x64xf32, #tpu.memory_space<vmem>>, vector<8x64xf32>
    %cst_129 = arith.constant dense<0.000000e+00> : vector<8x64xf32>
    %305 = tpu.matmul %302, %1, %cst_129 {dimension_numbers = #tpu.dot_dimension_numbers<[1], [0], [0], [1], [0, 0, 1, 1], [], []>} : vector<8x16xf32>, vector<16x64xf32>, vector<8x64xf32> -> vector<8x64xf32>
    %306 = arith.addf %304, %305 : vector<8x64xf32>
    %307 = arith.mulf %306, %77 : vector<8x64xf32>
    %308 = math.tanh %307 : vector<8x64xf32>
    %309 = arith.mulf %308, %77 : vector<8x64xf32>
    %310 = arith.addf %309, %80 : vector<8x64xf32>
    %311 = vector.extract_strided_slice %310 {offsets = [0, 0], sizes = [8, 16], strides = [1, 1]} : vector<8x64xf32> to vector<8x16xf32>
    %312 = vector.extract_strided_slice %310 {offsets = [0, 16], sizes = [8, 16], strides = [1, 1]} : vector<8x64xf32> to vector<8x16xf32>
    %313 = vector.extract_strided_slice %310 {offsets = [0, 32], sizes = [8, 16], strides = [1, 1]} : vector<8x64xf32> to vector<8x16xf32>
    %314 = vector.extract_strided_slice %310 {offsets = [0, 48], sizes = [8, 16], strides = [1, 1]} : vector<8x64xf32> to vector<8x16xf32>
    %315 = arith.mulf %312, %300 : vector<8x16xf32>
    %316 = arith.mulf %311, %313 : vector<8x16xf32>
    %317 = arith.addf %315, %316 : vector<8x16xf32>
    %318 = math.tanh %317 : vector<8x16xf32>
    %319 = arith.mulf %314, %318 : vector<8x16xf32>
    %c0_130 = arith.constant 0 : index
    %c208 = arith.constant 208 : index
    %320 = vector.load %arg10[%c0_130, %c208] : memref<8x256xf32, #tpu.memory_space<vmem>>, vector<8x16xf32>
    tpu.vector_store %arg10[%c0_130, %c208], %319 {strides = array<i32>} : memref<8x256xf32, #tpu.memory_space<vmem>>, vector<8x16xf32>,
    %c112_131 = arith.constant 112 : index
    %c0_132 = arith.constant 0 : index
    %321 = vector.load %arg9[%c112_131, %c0_132] : memref<128x64xf32, #tpu.memory_space<vmem>>, vector<8x64xf32>
    %cst_133 = arith.constant dense<0.000000e+00> : vector<8x64xf32>
    %322 = tpu.matmul %319, %1, %cst_133 {dimension_numbers = #tpu.dot_dimension_numbers<[1], [0], [0], [1], [0, 0, 1, 1], [], []>} : vector<8x16xf32>, vector<16x64xf32>, vector<8x64xf32> -> vector<8x64xf32>
    %323 = arith.addf %321, %322 : vector<8x64xf32>
    %324 = arith.mulf %323, %77 : vector<8x64xf32>
    %325 = math.tanh %324 : vector<8x64xf32>
    %326 = arith.mulf %325, %77 : vector<8x64xf32>
    %327 = arith.addf %326, %80 : vector<8x64xf32>
    %328 = vector.extract_strided_slice %327 {offsets = [0, 0], sizes = [8, 16], strides = [1, 1]} : vector<8x64xf32> to vector<8x16xf32>
    %329 = vector.extract_strided_slice %327 {offsets = [0, 16], sizes = [8, 16], strides = [1, 1]} : vector<8x64xf32> to vector<8x16xf32>
    %330 = vector.extract_strided_slice %327 {offsets = [0, 32], sizes = [8, 16], strides = [1, 1]} : vector<8x64xf32> to vector<8x16xf32>
    %331 = vector.extract_strided_slice %327 {offsets = [0, 48], sizes = [8, 16], strides = [1, 1]} : vector<8x64xf32> to vector<8x16xf32>
    %332 = arith.mulf %329, %317 : vector<8x16xf32>
    %333 = arith.mulf %328, %330 : vector<8x16xf32>
    %334 = arith.addf %332, %333 : vector<8x16xf32>
    %335 = math.tanh %334 : vector<8x16xf32>
    %336 = arith.mulf %331, %335 : vector<8x16xf32>
    %c0_134 = arith.constant 0 : index
    %c224 = arith.constant 224 : index
    %337 = vector.load %arg10[%c0_134, %c224] : memref<8x256xf32, #tpu.memory_space<vmem>>, vector<8x16xf32>
    tpu.vector_store %arg10[%c0_134, %c224], %336 {strides = array<i32>} : memref<8x256xf32, #tpu.memory_space<vmem>>, vector<8x16xf32>,
    %c120_135 = arith.constant 120 : index
    %c0_136 = arith.constant 0 : index
    %338 = vector.load %arg9[%c120_135, %c0_136] : memref<128x64xf32, #tpu.memory_space<vmem>>, vector<8x64xf32>
    %cst_137 = arith.constant dense<0.000000e+00> : vector<8x64xf32>
    %339 = tpu.matmul %336, %1, %cst_137 {dimension_numbers = #tpu.dot_dimension_numbers<[1], [0], [0], [1], [0, 0, 1, 1], [], []>} : vector<8x16xf32>, vector<16x64xf32>, vector<8x64xf32> -> vector<8x64xf32>
    %340 = arith.addf %338, %339 : vector<8x64xf32>
    %341 = arith.mulf %340, %77 : vector<8x64xf32>
    %342 = math.tanh %341 : vector<8x64xf32>
    %343 = arith.mulf %342, %77 : vector<8x64xf32>
    %344 = arith.addf %343, %80 : vector<8x64xf32>
    %345 = vector.extract_strided_slice %344 {offsets = [0, 0], sizes = [8, 16], strides = [1, 1]} : vector<8x64xf32> to vector<8x16xf32>
    %346 = vector.extract_strided_slice %344 {offsets = [0, 16], sizes = [8, 16], strides = [1, 1]} : vector<8x64xf32> to vector<8x16xf32>
    %347 = vector.extract_strided_slice %344 {offsets = [0, 32], sizes = [8, 16], strides = [1, 1]} : vector<8x64xf32> to vector<8x16xf32>
    %348 = vector.extract_strided_slice %344 {offsets = [0, 48], sizes = [8, 16], strides = [1, 1]} : vector<8x64xf32> to vector<8x16xf32>
    %349 = arith.mulf %346, %334 : vector<8x16xf32>
    %350 = arith.mulf %345, %347 : vector<8x16xf32>
    %351 = arith.addf %349, %350 : vector<8x16xf32>
    %352 = math.tanh %351 : vector<8x16xf32>
    %353 = arith.mulf %348, %352 : vector<8x16xf32>
    %c0_138 = arith.constant 0 : index
    %c240_139 = arith.constant 240 : index
    %354 = vector.load %arg10[%c0_138, %c240_139] : memref<8x256xf32, #tpu.memory_space<vmem>>, vector<8x16xf32>
    tpu.vector_store %arg10[%c0_138, %c240_139], %353 {strides = array<i32>} : memref<8x256xf32, #tpu.memory_space<vmem>>, vector<8x16xf32>,
    %c0_140 = arith.constant 0 : index
    %c0_141 = arith.constant 0 : index
    %355 = vector.load %arg10[%c0_140, %c0_141] : memref<8x256xf32, #tpu.memory_space<vmem>>, vector<8x256xf32>
    %c0_142 = arith.constant 0 : index
    %c0_143 = arith.constant 0 : index
    %356 = vector.load %arg4[%c0_142, %c0_143] : memref<256x26xf32, #tpu.memory_space<vmem>>, vector<256x26xf32>
    %cst_144 = arith.constant dense<0.000000e+00> : vector<8x26xf32>
    %357 = tpu.matmul %355, %356, %cst_144 {dimension_numbers = #tpu.dot_dimension_numbers<[1], [0], [0], [1], [0, 0, 1, 1], [], []>} : vector<8x256xf32>, vector<256x26xf32>, vector<8x26xf32> -> vector<8x26xf32>
    %c0_145 = arith.constant 0 : index
    %c0_146 = arith.constant 0 : index
    %358 = vector.load %arg5[%c0_145, %c0_146] : memref<1x26xf32, #tpu.memory_space<vmem>>, vector<1x26xf32>
    %359 = vector.broadcast %358 : vector<1x26xf32> to vector<8x26xf32>
    %360 = arith.addf %357, %359 : vector<8x26xf32>
    %cst_147 = arith.constant 0.000000e+00 : f32
    %361 = vector.broadcast %cst_147 : f32 to vector<8x26xf32>
    %362 = arith.maximumf %360, %361 : vector<8x26xf32>
    %c0_148 = arith.constant 0 : index
    %c0_149 = arith.constant 0 : index
    %363 = vector.load %arg6[%c0_148, %c0_149] : memref<26x2xf32, #tpu.memory_space<vmem>>, vector<26x2xf32>
    %cst_150 = arith.constant dense<0.000000e+00> : vector<8x2xf32>
    %364 = tpu.matmul %362, %363, %cst_150 {dimension_numbers = #tpu.dot_dimension_numbers<[1], [0], [0], [1], [0, 0, 1, 1], [], []>} : vector<8x26xf32>, vector<26x2xf32>, vector<8x2xf32> -> vector<8x2xf32>
    %c0_151 = arith.constant 0 : index
    %c0_152 = arith.constant 0 : index
    %365 = vector.load %arg7[%c0_151, %c0_152] : memref<1x2xf32, #tpu.memory_space<vmem>>, vector<1x2xf32>
    %366 = vector.broadcast %365 : vector<1x2xf32> to vector<8x2xf32>
    %367 = arith.addf %364, %366 : vector<8x2xf32>
    %cst_153 = arith.constant dense<0xFF800000> : vector<8xf32>
    %368 = vector.multi_reduction <maximumf>, %367, %cst_153 [1] : vector<8x2xf32> to vector<8xf32>
    %369 = vector.shape_cast %368 : vector<8xf32> to vector<8x1xf32>
    %370 = vector.broadcast %369 : vector<8x1xf32> to vector<8x2xf32>
    %371 = arith.subf %367, %370 : vector<8x2xf32>
    %372 = math.exp %371 : vector<8x2xf32>
    %cst_154 = arith.constant dense<0.000000e+00> : vector<8xf32>
    %373 = vector.multi_reduction <add>, %372, %cst_154 [1] : vector<8x2xf32> to vector<8xf32>
    %374 = vector.shape_cast %373 : vector<8xf32> to vector<8x1xf32>
    %375 = tpu.reciprocal %374 {approx = true} : vector<8x1xf32> -> vector<8x1xf32>
    %376 = vector.broadcast %375 : vector<8x1xf32> to vector<8x2xf32>
    %377 = arith.mulf %372, %376 : vector<8x2xf32>
    %c0_155 = arith.constant 0 : index
    %c0_156 = arith.constant 0 : index
    %378 = vector.load %arg8[%c0_155, %c0_156] : memref<8x2xf32, #tpu.memory_space<vmem>>, vector<8x2xf32>
    tpu.vector_store %arg8[%c0_155, %c0_156], %377 {strides = array<i32>} : memref<8x2xf32, #tpu.memory_space<vmem>>, vector<8x2xf32>,
    return
  }
}

</mosaic_0001>

<bundles_post_ra>
// kernel: net_forward.1
= control target key start
LH: loop header
LB: loop body
LE: loop exit
PB: predicated region body
PF: predicated region fallthrough
CT: control target
= control target key end

     0   :  { %v3816_v2 = vmov 0.0|0.0   ;;  %vm3817_vm0 = vmmov 0   ;;  %v3818_v3 = vmov 0.0   ;;  %s3819_s9 = smov 32   ;;  %s3820_s10 = smov 64   ;;  %vm42_vm1 = vcmask 195584   ;;  %s4492_s0 = inlined_call_operand.vmem [shape: f32[8,384], index: 0, kind: input, shape index: {}]   ;;  %s4493_s1 = inlined_call_operand.vmem [shape: f32[24,64], index: 1, kind: input, shape index: {}]   ;;  %s4494_s2 = inlined_call_operand.vmem [shape: f32[16,64], index: 2, kind: input, shape index: {}]   ;;  %s4495_s3 = inlined_call_operand.vmem [shape: f32[1,64], index: 3, kind: input, shape index: {}]   ;;  %s4496_s4 = inlined_call_operand.vmem [shape: f32[256,26], index: 4, kind: input, shape index: {}]   ;;  %s4497_s6 = inlined_call_operand.vmem [shape: f32[26,2], index: 6, kind: input, shape index: {}]   ;;  %s4498_s5 = inlined_call_operand.vmem [shape: f32[1,26], index: 5, kind: input, shape index: {}]   ;;  %s4499_s7 = inlined_call_operand.vmem [shape: f32[1,2], index: 7, kind: input, shape index: {}]   ;;  %s4500_s8 = inlined_call_operand.vmem [shape: f32[8,2], index: 8, kind: output, shape index: {}]  }
   0x1   :  { %v3884_v0 = vld [vmem:[%s4492_s0] sm:$0xff]  ;;  %v3889_v1 = vld [vmem:[%s4492_s0 + $0x8] sm:$0xff]  ;;  %3605 = vmatprep.subr.bf16.mxu0 %v3816_v2  ;;  %3368 = vmatprep.mubr.msk.f32.mxu0 %vm3817_vm0, %v3818_v3  ;;  %s3821_s15 = smov 112   ;;  %s3822_s16 = smov 16   ;;  %v3918_v7 = vld [vmem:[%s4493_s1 + $0x10] sm:$0xff]  ;;  %vm825_vm2 = vcmask 130048   ;;  %v1285_v36 = vlaneseq }
   0x2   :  { %351 = vrot.lane.b32.xlu0 %v3884_v0, %s3819_s9  ;;  %665 = vrot.lane.b32.xlu1 %v3889_v1, %s3820_s10  ;;  %v29_v4 = vld [vmem:[%s4493_s1] sm:$0xff]  ;;  %v30_v5 = vld [vmem:[%s4493_s1 + $0x8] sm:$0xff]  ;;  %s3823_s21 = smov 96   ;;  %vm116_vm3 = vcmask 523264   ;;  %v3825_v45 = vmov 0.5   ;;  %s3827_s26 = smov 56  }
   0x3   :  { %v3904_v6 = vpack.c.bf16 %v30_v5, %v29_v4  ;;  %3593 = vmatprep.subr.bf16.mxu1 %v3816_v2  ;;  %3332 = vmatprep.mubr.msk.f32.mxu1 %vm3817_vm0, %v3818_v3  ;;  %v3923_v8 = vld [vmem:[%s4492_s0 + $0x10] sm:$0xff]  ;;  %s3824_s0 = smov 48   ;;  %v32_v16 = vld [vmem:[%s4494_s2] sm:$0xff]  ;;  %v33_v17 = vld [vmem:[%s4494_s2 + $0x8] sm:$0xff]  ;;  %v1286_v38 = vand.u32 127, %v1285_v36  ;;  %s3828_s27 = smov 8  }
   0x4   :  { %v3985_v19 = vpack.c.bf16 %v33_v17, %v32_v16  ;;  %v4002_v20 = vld [vmem:[%s4495_s3] ss:$0 sm:$0xff]  ;;  %s3826_s3 = smov 104   ;;  %s3829_s28 = smov 40   ;;  %vm434_vm7 = vcmask 64512   ;;  %vm1492_vm8 = vcmask 261248  }
   0x5   :  { %3607 = vmatpush3.bf16.msra.mxu0 %v3904_v6  ;;  %3595 = vmatpush3.bf16.msra.mxu1 %v3904_v6  ;;  %vm1287_vm4 = vcmp.ge.s32.totalorder %v1286_v38, 32  ;;  %vm1288_vm5 = vcmp.lt.s32.totalorder %v1286_v38, 48  ;;  %s3830_s29 = smov 72   ;;  %s3831_s30 = smov 80   ;;  %vm1595_vm9 = vcmask 392448   ;;  %vm1694_vm10 = vcmask 523648  }
   0x6   :  { %511 = vrot.lane.b32.xlu0 %v3889_v1, %s3821_s15  ;;  %821 = vrot.lane.b32.xlu1 %v3889_v1, %s3822_s16  ;;  %vm1289_vm6 = vmand %vm1287_vm4, %vm1288_vm5  ;;  %s3832_s11 = smov 88   ;;  %s3833_s12 = smov 120   ;;  %vm1798_vm11 = vcmask 654848   ;;  %vm1901_vm12 = vcmask 786048   ;;  %vm2004_vm13 = vcmask 917248   ;;  %vm2107_vm14 = vcmask 1048448  }
   0x7   :  { %3366 = vmatprep.subr.mxu0 %v3818_v3  ;;  %3330 = vmatprep.subr.mxu1 %v3818_v3  ;;  %v4018_v46 = vsel %vm1289_vm6, 1.0, %v3825_v45  ;;  %v4021_v52 = vsel %vm1289_vm6, 0.0, %v3825_v45  ;;  %s3834_s13 = smov 24   ;;  %vm3047_vm15 = vcmask 1041408  }
   0x9   :  { %3367 = vmatpush3.msra.mxu0 %v3918_v7  ;;  %3331 = vmatpush3.msra.mxu1 %v3918_v7 }
   0xa   :  { %823 = vrot.lane.b32.xlu0 %v3923_v8, %s3822_s16  ;;  %979 = vrot.lane.b32.xlu1 %v3923_v8, %s3823_s21 }
   0xb   :  { %3611 = vmatprep.subr.bf16.mxu0 %v3816_v2  ;;  %3333 = vmatmul.mubr.msk.f32.vlgmr.msra.gmra.mrb[0].mxu1 %vm42_vm1, %v3884_v0 }
   0xc   :  { %3596 = vmatprep.subr.bf16.mxu1 %v3816_v2  ;;  %3341 = vmatprep.mubr.msk.f32.mxu1 %vm3817_vm0, %v3818_v3 }
   0xd   :  { %3598 = vmatpush3.bf16.msra.mxu1 %v3904_v6 }
   0xe   :  { %1133 = vrot.lane.b32.xlu0 %v3923_v8, %s3824_s0  ;;  %3339 = vmatprep.subr.mxu1 %v3818_v3 }
  0x11   :  { %3340 = vmatpush3.msra.mxu1 %v3918_v7 }
  0x12   :  { %3599 = vmatprep.subr.bf16.mxu1 %v3816_v2 }
  0x74   :  { %v352_v9 = vpop.permute.xlu0 %351  ;;  %v666_v11 = vpop.permute.xlu1 %665 }
  0x75   :  { %3369 = vmatmul.mubr.msk.f32.vlgmr.msra.gmra.mrb[0].mxu0 %vm42_vm1, %v352_v9 }
  0x76   :  { %3613 = vmatpush3.bf16.msra.mxu0 %v3904_v6  ;;  %3386 = vmatprep.mubr.msk.f32.mxu0 %vm3817_vm0, %v3818_v3 }
  0x77   :  { %3384 = vmatprep.subr.mxu0 %v3818_v3 }
  0x78   :  { %v512_v10 = vpop.permute.xlu0 %511  ;;  %v822_v12 = vpop.permute.xlu1 %821 }
  0x7a   :  { %3385 = vmatpush3.msra.mxu0 %v3918_v7 }
  0x7b   :  { %3387 = vmatmul.mubr.msk.f32.vlgmr.msra.gmra.mrb[2].mxu0 %vm42_vm1, %v512_v10  ;;  %3617 = vmatprep.subr.bf16.mxu0 %v3816_v2 }
  0x7c   :  { %3619 = vmatpush3.bf16.msra.mxu0 %v3904_v6  ;;  %3404 = vmatprep.mubr.msk.f32.mxu0 %vm3817_vm0, %v3818_v3  ;;  %v824_v13 = vpop.permute.xlu0 %823  ;;  %v980_v15 = vpop.permute.xlu1 %979 }
  0x7d   :  { %3402 = vmatprep.subr.mxu0 %v3818_v3  ;;  %v826_v14 = vsel %vm825_vm2, %v822_v12, %v824_v13 }
  0x80   :  { %3403 = vmatpush3.msra.mxu0 %v3918_v7  ;;  %v1134_v18 = vpop.permute.xlu0 %1133 }
  0x81   :  { %3405 = vmatmul.mubr.msk.f32.vlgmr.msra.gmra.mrb[4].mxu0 %vm42_vm1, %v666_v11  ;;  %3623 = vmatprep.subr.bf16.mxu0 %v3816_v2 }
  0x82   :  { %3625 = vmatpush3.bf16.msra.mxu0 %v3904_v6  ;;  %3422 = vmatprep.mubr.msk.f32.mxu0 %vm3817_vm0, %v3818_v3 }
  0x83   :  { %3420 = vmatprep.subr.mxu0 %v3818_v3 }
  0x86   :  { %3421 = vmatpush3.msra.mxu0 %v3918_v7 }
  0x87   :  { %3423 = vmatmul.mubr.msk.f32.vlgmr.msra.gmra.mrb[6].mxu0 %vm42_vm1, %v826_v14  ;;  %3629 = vmatprep.subr.bf16.mxu0 %v3816_v2 }
  0x88   :  { %3631 = vmatpush3.bf16.msra.mxu0 %v3904_v6  ;;  %3440 = vmatprep.mubr.msk.f32.mxu0 %vm3817_vm0, %v3818_v3 }
  0x89   :  { %3438 = vmatprep.subr.mxu0 %v3818_v3 }
  0x8c   :  { %3439 = vmatpush3.msra.mxu0 %v3918_v7 }
  0x8d   :  { %3441 = vmatmul.mubr.msk.f32.vlgmr.msra.gmra.mrb[8].mxu0 %vm42_vm1, %v980_v15  ;;  %3635 = vmatprep.subr.bf16.mxu0 %v3816_v2 }
  0x8e   :  { %3637 = vmatpush3.bf16.msra.mxu0 %v3904_v6  ;;  %3458 = vmatprep.mubr.msk.f32.mxu0 %vm3817_vm0, %v3818_v3 }
  0x8f   :  { %3456 = vmatprep.subr.mxu0 %v3818_v3 }
  0x92   :  { %3457 = vmatpush3.msra.mxu0 %v3918_v7 }
  0x93   :  { %3459 = vmatmul.mubr.msk.f32.vlgmr.msra.gmra.mrb[10].mxu0 %vm42_vm1, %v1134_v18  ;;  %3641 = vmatprep.subr.bf16.mxu0 %v3816_v2 }
  0x94   :  { %3643 = vmatpush3.bf16.msra.mxu0 %v3985_v19  ;;  %3474 = vmatprep.mubr.msk.f32.mxu0 %vm3817_vm0, %v3818_v3 }
  0x95   :  { %3647 = vmatprep.subr.bf16.mxu0 %v3816_v2 }
  0x97   :  { %3475 = vmatmul.mubr.f32.vlgmr.msra.gmra.mrb[12].mxu0 %v3818_v3 }
  0x98   :  { %3649 = vmatpush3.bf16.msra.mxu0 %v3985_v19  ;;  %3488 = vmatprep.mubr.msk.f32.mxu0 %vm3817_vm0, %v3818_v3 }
  0x99   :  { %3653 = vmatprep.subr.bf16.mxu0 %v3816_v2 }
  0xde   :  { %v112_v21 = vpop.f32.mrb[0].mxu1 }
  0xdf   :  { %v113_v22 = vadd.f32 %v4002_v20, %v112_v21  ;;  %v3334_v23 = vpop.f32.mrb[1].mxu1 }
  0xe1   :  { %117 = vst.msk [vmem:[#allocation2] sm:$0xff] %vm116_vm3, %v113_v22 }
  0xe8   :  { %v1292_v44 = vld [vmem:[#allocation2] sm:$0xff] }
 0x148   :  { %v421_v24 = vpop.f32.mrb[0].mxu0 }
 0x149   :  { %v422_v25 = vadd.f32 %v4002_v20, %v421_v24  ;;  %v3370_v26 = vpop.f32.mrb[1].mxu0 }
 0x14b   :  { %425 = vst.msk [vmem:[#allocation2 + $0x20] sm:$0xff] %vm116_vm3, %v422_v25 }
 0x14e   :  { %v581_v27 = vpop.f32.mrb[2].mxu0 }
 0x14f   :  { %v582_v28 = vadd.f32 %v4002_v20, %v581_v27  ;;  %v3388_v29 = vpop.f32.mrb[3].mxu0 }
 0x151   :  { %585 = vst.msk [vmem:[#allocation2 + $0x30] sm:$0xff] %vm116_vm3, %v582_v28 }
 0x154   :  { %v735_v30 = vpop.f32.mrb[4].mxu0 }
 0x155   :  { %v736_v31 = vadd.f32 %v4002_v20, %v735_v30  ;;  %v3406_v32 = vpop.f32.mrb[5].mxu0 }
 0x157   :  { %739 = vst.msk [vmem:[#allocation2 + $0x40] sm:$0xff] %vm116_vm3, %v736_v31 }
 0x15a   :  { %v895_v33 = vpop.f32.mrb[6].mxu0 }
 0x15b   :  { %v896_v34 = vadd.f32 %v4002_v20, %v895_v33  ;;  %v3424_v35 = vpop.f32.mrb[7].mxu0 }
 0x15d   :  { %899 = vst.msk [vmem:[#allocation2 + $0x50] sm:$0xff] %vm116_vm3, %v896_v34 }
 0x160   :  { %v1049_v37 = vpop.f32.mrb[8].mxu0 }
 0x161   :  { %v1050_v39 = vadd.f32 %v4002_v20, %v1049_v37  ;;  %v3442_v40 = vpop.f32.mrb[9].mxu0 }
 0x163   :  { %1053 = vst.msk [vmem:[#allocation2 + $0x60] sm:$0xff] %vm116_vm3, %v1050_v39 }
 0x166   :  { %v1203_v41 = vpop.f32.mrb[10].mxu0 }
 0x167   :  { %v1204_v42 = vadd.f32 %v4002_v20, %v1203_v41  ;;  %v3460_v43 = vpop.f32.mrb[11].mxu0 }
 0x169   :  { %1207 = vst.msk [vmem:[#allocation2 + $0x70] sm:$0xff] %vm116_vm3, %v1204_v42 }
 0x16a   :  { %v1362_v47 = vpop.f32.mrb[12].mxu0 }
 0x16b   :  { %v1366_v48 = vadd.f32 %v1362_v47, %v1292_v44  ;;  %v3476_v49 = vpop.f32.mrb[13].mxu0 }
 0x16d   :  { %v1367_v50 = vmul.f32 %v1366_v48, %v4018_v46 }
 0x16f   :  { %3748 = vtanh.f32 %v1367_v50 }
 0x179   :  { %v3749_v51 = vpop.eup %3748 }
 0x17a   :  { %v1369_v53 = vmul.f32 %v3749_v51, %v4018_v46 }
 0x17c   :  { %v1370_v54 = vadd.f32 %v1369_v53, %v4021_v52 }
 0x17e   :  { %1373 = vrot.lane.b32.xlu1 %v1370_v54, %s3823_s21  ;;  %v1371_v57 = vmul.f32 0.0, %v1370_v54 }
 0x1f0   :  { %v1374_v55 = vpop.permute.xlu1 %1373 }
 0x1f1   :  { %v1376_v56 = vmul.f32 %v1374_v55, %v1370_v54 }
 0x1f3   :  { %1378 = vrot.lane.b32.xlu0 %v1376_v56, %s3822_s16 }
 0x1f7   :  { %120 = vrot.lane.b32.xlu0 %v3884_v0, %s3826_s3 }
 0x1fb   :  { %274 = vrot.lane.b32.xlu0 %v3884_v0, %s3827_s26 }
 0x1ff   :  { %432 = vrot.lane.b32.xlu0 %v3889_v1, %s3828_s27 }
 0x203   :  { %742 = vrot.lane.b32.xlu0 %v3889_v1, %s3829_s28 }
 0x207   :  { %1056 = vrot.lane.b32.xlu0 %v3923_v8, %s3830_s29 }
 0x265   :  { %v1379_v58 = vpop.permute.xlu0 %1378 }
 0x266   :  { %v4032_v59 = vadd.f32 %v1379_v58, %v1371_v57 }
 0x268   :  { %3750 = vtanh.f32 %v4032_v59 }
 0x269   :  { %v121_v60 = vpop.permute.xlu0 %120 }
 0x26a   :  { %3342 = vmatmul.mubr.msk.f32.vlgmr.msra.gmra.mrb[2].mxu1 %vm42_vm1, %v121_v60 }
 0x26b   :  { %3601 = vmatpush3.bf16.msra.mxu1 %v3904_v6  ;;  %3350 = vmatprep.mubr.msk.f32.mxu1 %vm3817_vm0, %v3818_v3 }
 0x26c   :  { %3348 = vmatprep.subr.mxu1 %v3818_v3 }
 0x26d   :  { %v275_v5 = vpop.permute.xlu0 %274 }
 0x26f   :  { %3349 = vmatpush3.msra.mxu1 %v3918_v7 }
 0x270   :  { %3602 = vmatprep.subr.bf16.mxu1 %v3816_v2 }
 0x272   :  { %v3751_v61 = vpop.eup %3750 }
 0x273   :  { %1384 = vrot.lane.b32.xlu1 %v3751_v61, %s3819_s9 }
 0x277   :  { %197 = vrot.lane.b32.xlu1 %v3884_v0, %s3831_s30 }
 0x27b   :  { %430 = vrot.lane.b32.xlu1 %v3884_v0, %s3828_s27  ;;  %v433_v0 = vpop.permute.xlu0 %432 }
 0x27f   :  { %588 = vrot.lane.b32.xlu1 %v3889_v1, %s3832_s11  ;;  %v743_v10 = vpop.permute.xlu0 %742 }
 0x283   :  { %902 = vrot.lane.b32.xlu1 %v3923_v8, %s3833_s12  ;;  %v1057_v12 = vpop.permute.xlu0 %1056 }
 0x287   :  { %1210 = vrot.lane.b32.xlu1 %v3923_v8, %s3834_s13 }
 0x2e5   :  { %v1385_v62 = vpop.permute.xlu1 %1384 }
 0x2e6   :  { %v1387_v63 = vmul.f32 %v1385_v62, %v1370_v54 }
 0x2e8   :  { %1389 = vrot.lane.b32.xlu0 %v1387_v63, %s3831_s30 }
 0x2e9   :  { %v198_v4 = vpop.permute.xlu1 %197 }
 0x2ea   :  { %3351 = vmatmul.mubr.msk.f32.vlgmr.msra.gmra.mrb[4].mxu1 %vm42_vm1, %v198_v4 }
 0x2eb   :  { %3604 = vmatpush3.bf16.msra.mxu1 %v3904_v6  ;;  %3359 = vmatprep.mubr.msk.f32.mxu1 %vm3817_vm0, %v3818_v3 }
 0x2ec   :  { %3357 = vmatprep.subr.mxu1 %v3818_v3 }
 0x2ed   :  { %v431_v1 = vpop.permute.xlu1 %430 }
 0x2ee   :  { %v435_v8 = vsel %vm434_vm7, %v431_v1, %v433_v0 }
 0x2ef   :  { %3358 = vmatpush3.msra.mxu1 %v3918_v7 }
 0x2f0   :  { %3360 = vmatmul.mubr.msk.f32.vlgmr.msra.gmra.mrb[6].mxu1 %vm42_vm1, %v275_v5  ;;  %3608 = vmatprep.subr.bf16.mxu1 %v3816_v2 }
 0x2f1   :  { %3610 = vmatpush3.bf16.msra.mxu1 %v3904_v6  ;;  %3377 = vmatprep.mubr.msk.f32.mxu1 %vm3817_vm0, %v3818_v3  ;;  %v589_v9 = vpop.permute.xlu1 %588 }
 0x2f2   :  { %3375 = vmatprep.subr.mxu1 %v3818_v3 }
 0x2f5   :  { %3376 = vmatpush3.msra.mxu1 %v3918_v7  ;;  %v903_v11 = vpop.permute.xlu1 %902 }
 0x2f6   :  { %3378 = vmatmul.mubr.msk.f32.vlgmr.msra.gmra.mrb[8].mxu1 %vm42_vm1, %v435_v8  ;;  %3614 = vmatprep.subr.bf16.mxu1 %v3816_v2 }
 0x2f7   :  { %3616 = vmatpush3.bf16.msra.mxu1 %v3904_v6  ;;  %3395 = vmatprep.mubr.msk.f32.mxu1 %vm3817_vm0, %v3818_v3 }
 0x2f8   :  { %3393 = vmatprep.subr.mxu1 %v3818_v3 }
 0x2f9   :  { %v1211_v13 = vpop.permute.xlu1 %1210 }
 0x2fb   :  { %3394 = vmatpush3.msra.mxu1 %v3918_v7 }
 0x2fc   :  { %3396 = vmatmul.mubr.msk.f32.vlgmr.msra.gmra.mrb[10].mxu1 %vm42_vm1, %v589_v9  ;;  %3620 = vmatprep.subr.bf16.mxu1 %v3816_v2 }
 0x2fd   :  { %3622 = vmatpush3.bf16.msra.mxu1 %v3904_v6  ;;  %3413 = vmatprep.mubr.msk.f32.mxu1 %vm3817_vm0, %v3818_v3 }
 0x2fe   :  { %3411 = vmatprep.subr.mxu1 %v3818_v3 }
 0x301   :  { %3412 = vmatpush3.msra.mxu1 %v3918_v7 }
 0x302   :  { %3414 = vmatmul.mubr.msk.f32.vlgmr.msra.gmra.mrb[12].mxu1 %vm42_vm1, %v743_v10  ;;  %3626 = vmatprep.subr.bf16.mxu1 %v3816_v2 }
 0x303   :  { %3628 = vmatpush3.bf16.msra.mxu1 %v3904_v6  ;;  %3431 = vmatprep.mubr.msk.f32.mxu1 %vm3817_vm0, %v3818_v3 }
 0x304   :  { %3429 = vmatprep.subr.mxu1 %v3818_v3 }
 0x307   :  { %3430 = vmatpush3.msra.mxu1 %v3918_v7 }
 0x308   :  { %3432 = vmatmul.mubr.msk.f32.vlgmr.msra.gmra.mrb[14].mxu1 %vm42_vm1, %v903_v11  ;;  %3632 = vmatprep.subr.bf16.mxu1 %v3816_v2 }
 0x309   :  { %3634 = vmatpush3.bf16.msra.mxu1 %v3904_v6  ;;  %3449 = vmatprep.mubr.msk.f32.mxu1 %vm3817_vm0, %v3818_v3 }
 0x30a   :  { %3447 = vmatprep.subr.mxu1 %v3818_v3 }
 0x30d   :  { %3448 = vmatpush3.msra.mxu1 %v3918_v7 }
 0x30e   :  { %3450 = vmatmul.mubr.msk.f32.vlgmr.msra.gmra.mrb[16].mxu1 %vm42_vm1, %v1057_v12  ;;  %3638 = vmatprep.subr.bf16.mxu1 %v3816_v2 }
 0x30f   :  { %3640 = vmatpush3.bf16.msra.mxu1 %v3904_v6  ;;  %3467 = vmatprep.mubr.msk.f32.mxu1 %vm3817_vm0, %v3818_v3 }
 0x310   :  { %3465 = vmatprep.subr.mxu1 %v3818_v3 }
 0x313   :  { %3466 = vmatpush3.msra.mxu1 %v3918_v7 }
 0x314   :  { %3468 = vmatmul.mubr.msk.f32.vlgmr.msra.gmra.mrb[18].mxu1 %vm42_vm1, %v1211_v13  ;;  %3644 = vmatprep.subr.bf16.mxu1 %v3816_v2 }
 0x315   :  { %3646 = vmatpush3.bf16.msra.mxu1 %v3985_v19  ;;  %3481 = vmatprep.mubr.msk.f32.mxu1 %vm3817_vm0, %v3818_v3 }
 0x316   :  { %3650 = vmatprep.subr.bf16.mxu1 %v3816_v2 }
 0x33d   :  { %v190_v6 = vpop.f32.mrb[2].mxu1 }
 0x33e   :  { %v191_v14 = vadd.f32 %v4002_v20, %v190_v6  ;;  %v3343_v15 = vpop.f32.mrb[3].mxu1 }
 0x340   :  { %194 = vst.msk [vmem:[#allocation2 + $0x8] sm:$0xff] %vm116_vm3, %v191_v14 }
 0x347   :  { %v1393_v42 = vld [vmem:[#allocation2 + $0x8] sm:$0xff] }
 0x35a   :  { %v1390_v16 = vpop.permute.xlu0 %1389 }
 0x35b   :  { %1392 = vst.msk [vmem:[#allocation3] sm:$0xff] %vm825_vm2, %v1390_v16  ;;  %3482 = vmatmul.mubr.msk.f32.vlgmr.msra.gmra.mrb[20].mxu1 %vm825_vm2, %v1390_v16 }
 0x35c   :  { %3652 = vmatpush3.bf16.msra.mxu1 %v3985_v19  ;;  %3495 = vmatprep.mubr.msk.f32.mxu1 %vm3817_vm0, %v3818_v3 }
 0x35d   :  { %3656 = vmatprep.subr.bf16.mxu1 %v3816_v2 }
 0x3bd   :  { %v267_v7 = vpop.f32.mrb[4].mxu1 }
 0x3be   :  { %v268_v17 = vadd.f32 %v4002_v20, %v267_v7  ;;  %v3352_v18 = vpop.f32.mrb[5].mxu1 }
 0x3c0   :  { %271 = vst.msk [vmem:[#allocation2 + $0x10] sm:$0xff] %vm116_vm3, %v268_v17 }
 0x3c3   :  { %v344_v21 = vpop.f32.mrb[6].mxu1 }
 0x3c4   :  { %v345_v22 = vadd.f32 %v4002_v20, %v344_v21  ;;  %v3361_v23 = vpop.f32.mrb[7].mxu1 }
 0x3c6   :  { %348 = vst.msk [vmem:[#allocation2 + $0x18] sm:$0xff] %vm116_vm3, %v345_v22 }
 0x3c9   :  { %v504_v24 = vpop.f32.mrb[8].mxu1 }
 0x3ca   :  { %v505_v25 = vadd.f32 %v4002_v20, %v504_v24  ;;  %v3379_v26 = vpop.f32.mrb[9].mxu1 }
 0x3cc   :  { %508 = vst.msk [vmem:[#allocation2 + $0x28] sm:$0xff] %vm116_vm3, %v505_v25 }
 0x3cd   :  { %v1597_v16 = vld [vmem:[#allocation2 + $0x18] sm:$0xff] }
 0x3cf   :  { %v658_v27 = vpop.f32.mrb[10].mxu1 }
 0x3d0   :  { %v659_v28 = vadd.f32 %v4002_v20, %v658_v27  ;;  %v3397_v29 = vpop.f32.mrb[11].mxu1 }
 0x3d2   :  { %662 = vst.msk [vmem:[#allocation2 + $0x38] sm:$0xff] %vm116_vm3, %v659_v28 }
 0x3d5   :  { %v812_v30 = vpop.f32.mrb[12].mxu1 }
 0x3d6   :  { %v813_v31 = vadd.f32 %v4002_v20, %v812_v30  ;;  %v3415_v32 = vpop.f32.mrb[13].mxu1 }
 0x3d8   :  { %816 = vst.msk [vmem:[#allocation2 + $0x48] sm:$0xff] %vm116_vm3, %v813_v31 }
 0x3db   :  { %v972_v33 = vpop.f32.mrb[14].mxu1 }
 0x3dc   :  { %v973_v34 = vadd.f32 %v4002_v20, %v972_v33  ;;  %v3433_v35 = vpop.f32.mrb[15].mxu1 }
 0x3de   :  { %976 = vst.msk [vmem:[#allocation2 + $0x58] sm:$0xff] %vm116_vm3, %v973_v34  ;;  %v1696_v34 = vld [vmem:[#allocation2 + $0x20] sm:$0xff] }
 0x3e1   :  { %v1126_v36 = vpop.f32.mrb[16].mxu1 }
 0x3e2   :  { %v1127_v37 = vadd.f32 %v4002_v20, %v1126_v36  ;;  %v3451_v38 = vpop.f32.mrb[17].mxu1 }
 0x3e4   :  { %1130 = vst.msk [vmem:[#allocation2 + $0x68] sm:$0xff] %vm116_vm3, %v1127_v37 }
 0x3e7   :  { %v1280_v39 = vpop.f32.mrb[18].mxu1 }
 0x3e8   :  { %v1281_v40 = vadd.f32 %v4002_v20, %v1280_v39  ;;  %v3469_v41 = vpop.f32.mrb[19].mxu1 }
 0x3ea   :  { %1284 = vst.msk [vmem:[#allocation2 + $0x78] sm:$0xff] %vm116_vm3, %v1281_v40  ;;  %vm3121_vm3 = vcmask 15360  }
 0x42e   :  { %v1462_v43 = vpop.f32.mrb[20].mxu1 }
 0x42f   :  { %v1466_v44 = vadd.f32 %v1462_v43, %v1393_v42  ;;  %v3483_v45 = vpop.f32.mrb[21].mxu1 }
 0x431   :  { %v1467_v47 = vmul.f32 %v1466_v44, %v4018_v46 }
 0x433   :  { %3752 = vtanh.f32 %v1467_v47 }
 0x43d   :  { %v3753_v48 = vpop.eup %3752 }
 0x43e   :  { %v1469_v49 = vmul.f32 %v3753_v48, %v4018_v46 }
 0x440   :  { %v1470_v50 = vadd.f32 %v1469_v49, %v4021_v52 }
 0x442   :  { %1473 = vrot.lane.b32.xlu1 %v1470_v50, %s3823_s21  ;;  %v1471_v20 = vmul.f32 %v1470_v50, %v4032_v59  ;;  %v1494_v59 = vld [vmem:[#allocation2 + $0x10] sm:$0xff] }
 0x4b4   :  { %v1474_v51 = vpop.permute.xlu1 %1473 }
 0x4b5   :  { %v1476_v53 = vmul.f32 %v1474_v51, %v1470_v50 }
 0x4b7   :  { %1478 = vrot.lane.b32.xlu0 %v1476_v53, %s3822_s16  ;;  %v1800_v53 = vld [vmem:[#allocation2 + $0x28] sm:$0xff] }
 0x529   :  { %v1479_v54 = vpop.permute.xlu0 %1478 }
 0x52a   :  { %v1481_v55 = vadd.f32 %v1479_v54, %v1471_v20 }
 0x52c   :  { %3754 = vtanh.f32 %v1481_v55 }
 0x536   :  { %v3755_v56 = vpop.eup %3754 }
 0x537   :  { %1484 = vrot.lane.b32.xlu1 %v3755_v56, %s3819_s9 }
 0x5a9   :  { %v1485_v57 = vpop.permute.xlu1 %1484 }
 0x5aa   :  { %v4135_v58 = vmul.f32 %v1485_v57, %v1470_v50 }
 0x5ac   :  { %1495 = vrot.lane.b32.xlu0 %v4135_v58, %s3831_s30 }
 0x61e   :  { %v1496_v60 = vpop.permute.xlu0 %1495 }
 0x61f   :  { %3489 = vmatmul.mubr.msk.f32.vlgmr.msra.gmra.mrb[14].mxu0 %vm825_vm2, %v1496_v60 }
 0x620   :  { %3655 = vmatpush3.bf16.msra.mxu0 %v3985_v19  ;;  %3502 = vmatprep.mubr.msk.f32.mxu0 %vm3817_vm0, %v3818_v3 }
 0x621   :  { %3659 = vmatprep.subr.bf16.mxu0 %v3816_v2 }
 0x6f2   :  { %v1565_v61 = vpop.f32.mrb[14].mxu0 }
 0x6f3   :  { %v1569_v62 = vadd.f32 %v1565_v61, %v1494_v59  ;;  %v3490_v63 = vpop.f32.mrb[15].mxu0 }
 0x6f5   :  { %v1570_v4 = vmul.f32 %v1569_v62, %v4018_v46 }
 0x6f7   :  { %3756 = vtanh.f32 %v1570_v4 }
 0x701   :  { %v3757_v5 = vpop.eup %3756 }
 0x702   :  { %v1572_v0 = vmul.f32 %v3757_v5, %v4018_v46 }
 0x704   :  { %v1573_v1 = vadd.f32 %v1572_v0, %v4021_v52 }
 0x706   :  { %1576 = vrot.lane.b32.xlu1 %v1573_v1, %s3823_s21  ;;  %v1574_v10 = vmul.f32 %v1573_v1, %v1481_v55 }
 0x778   :  { %v1577_v8 = vpop.permute.xlu1 %1576 }
 0x779   :  { %v1579_v9 = vmul.f32 %v1577_v8, %v1573_v1 }
 0x77b   :  { %1581 = vrot.lane.b32.xlu0 %v1579_v9, %s3822_s16 }
 0x7ed   :  { %v1582_v11 = vpop.permute.xlu0 %1581 }
 0x7ee   :  { %v1584_v12 = vadd.f32 %v1582_v11, %v1574_v10  ;;  %v1903_v10 = vld [vmem:[#allocation2 + $0x30] sm:$0xff] }
 0x7f0   :  { %3758 = vtanh.f32 %v1584_v12 }
 0x7fa   :  { %v3759_v13 = vpop.eup %3758 }
 0x7fb   :  { %1587 = vrot.lane.b32.xlu1 %v3759_v13, %s3819_s9 }
 0x86d   :  { %v1588_v6 = vpop.permute.xlu1 %1587 }
 0x86e   :  { %v4150_v14 = vmul.f32 %v1588_v6, %v1573_v1 }
 0x870   :  { %1598 = vrot.lane.b32.xlu0 %v4150_v14, %s3831_s30 }
 0x8e2   :  { %v1599_v15 = vpop.permute.xlu0 %1598 }
 0x8e3   :  { %3496 = vmatmul.mubr.msk.f32.vlgmr.msra.gmra.mrb[22].mxu1 %vm825_vm2, %v1599_v15 }
 0x8e4   :  { %3658 = vmatpush3.bf16.msra.mxu1 %v3985_v19  ;;  %3509 = vmatprep.mubr.msk.f32.mxu1 %vm3817_vm0, %v3818_v3 }
 0x8e5   :  { %3662 = vmatprep.subr.bf16.mxu1 %v3816_v2 }
 0x9b6   :  { %v1668_v7 = vpop.f32.mrb[22].mxu1 }
 0x9b7   :  { %v1672_v17 = vadd.f32 %v1668_v7, %v1597_v16  ;;  %v3497_v18 = vpop.f32.mrb[23].mxu1 }
 0x9b9   :  { %v1673_v21 = vmul.f32 %v1672_v17, %v4018_v46 }
 0x9bb   :  { %3760 = vtanh.f32 %v1673_v21 }
 0x9c5   :  { %v3761_v22 = vpop.eup %3760 }
 0x9c6   :  { %v1675_v23 = vmul.f32 %v3761_v22, %v4018_v46 }
 0x9c8   :  { %v1676_v24 = vadd.f32 %v1675_v23, %v4021_v52 }
 0x9ca   :  { %1679 = vrot.lane.b32.xlu1 %v1676_v24, %s3823_s21  ;;  %v1677_v27 = vmul.f32 %v1676_v24, %v1584_v12 }
 0xa3c   :  { %v1680_v25 = vpop.permute.xlu1 %1679 }
 0xa3d   :  { %v1682_v26 = vmul.f32 %v1680_v25, %v1676_v24 }
 0xa3f   :  { %1684 = vrot.lane.b32.xlu0 %v1682_v26, %s3822_s16 }
 0xab1   :  { %v1685_v28 = vpop.permute.xlu0 %1684 }
 0xab2   :  { %v1687_v29 = vadd.f32 %v1685_v28, %v1677_v27  ;;  %v2006_v28 = vld [vmem:[#allocation2 + $0x38] sm:$0xff] }
 0xab4   :  { %3762 = vtanh.f32 %v1687_v29 }
 0xabe   :  { %v3763_v30 = vpop.eup %3762 }
 0xabf   :  { %1690 = vrot.lane.b32.xlu1 %v3763_v30, %s3819_s9 }
 0xb31   :  { %v1691_v31 = vpop.permute.xlu1 %1690 }
 0xb32   :  { %v4165_v32 = vmul.f32 %v1691_v31, %v1676_v24 }
 0xb34   :  { %1698 = vrot.lane.b32.xlu0 %v4165_v32, %s3831_s30 }
 0xba6   :  { %v1699_v33 = vpop.permute.xlu0 %1698 }
 0xba7   :  { %3503 = vmatmul.mubr.msk.f32.vlgmr.msra.gmra.mrb[16].mxu0 %vm825_vm2, %v1699_v33 }
 0xba8   :  { %3661 = vmatpush3.bf16.msra.mxu0 %v3985_v19  ;;  %3516 = vmatprep.mubr.msk.f32.mxu0 %vm3817_vm0, %v3818_v3 }
 0xba9   :  { %3665 = vmatprep.subr.bf16.mxu0 %v3816_v2 }
 0xc7a   :  { %v1768_v35 = vpop.f32.mrb[16].mxu0 }
 0xc7b   :  { %v1772_v36 = vadd.f32 %v1768_v35, %v1696_v34  ;;  %v3504_v37 = vpop.f32.mrb[17].mxu0 }
 0xc7d   :  { %v1773_v38 = vmul.f32 %v1772_v36, %v4018_v46 }
 0xc7f   :  { %3764 = vtanh.f32 %v1773_v38 }
 0xc89   :  { %v3765_v39 = vpop.eup %3764 }
 0xc8a   :  { %v1775_v40 = vmul.f32 %v3765_v39, %v4018_v46 }
 0xc8c   :  { %v1776_v41 = vadd.f32 %v1775_v40, %v4021_v52 }
 0xc8e   :  { %1779 = vrot.lane.b32.xlu1 %v1776_v41, %s3823_s21  ;;  %v1777_v44 = vmul.f32 %v1776_v41, %v1687_v29 }
 0xd00   :  { %v1780_v42 = vpop.permute.xlu1 %1779 }
 0xd01   :  { %v1782_v43 = vmul.f32 %v1780_v42, %v1776_v41 }
 0xd03   :  { %1784 = vrot.lane.b32.xlu0 %v1782_v43, %s3822_s16 }
 0xd75   :  { %v1785_v45 = vpop.permute.xlu0 %1784 }
 0xd76   :  { %v1787_v47 = vadd.f32 %v1785_v45, %v1777_v44 }
 0xd78   :  { %3766 = vtanh.f32 %v1787_v47 }
 0xd82   :  { %v3767_v48 = vpop.eup %3766 }
 0xd83   :  { %1790 = vrot.lane.b32.xlu1 %v3767_v48, %s3819_s9 }
 0xdf5   :  { %v1791_v49 = vpop.permute.xlu1 %1790 }
 0xdf6   :  { %v4180_v50 = vmul.f32 %v1791_v49, %v1776_v41 }
 0xdf8   :  { %1801 = vrot.lane.b32.xlu0 %v4180_v50, %s3831_s30 }
 0xe6a   :  { %v1802_v51 = vpop.permute.xlu0 %1801 }
 0xe6b   :  { %3510 = vmatmul.mubr.msk.f32.vlgmr.msra.gmra.mrb[24].mxu1 %vm825_vm2, %v1802_v51 }
 0xe6c   :  { %3664 = vmatpush3.bf16.msra.mxu1 %v3985_v19  ;;  %3523 = vmatprep.mubr.msk.f32.mxu1 %vm3817_vm0, %v3818_v3 }
 0xe6d   :  { %3668 = vmatprep.subr.bf16.mxu1 %v3816_v2 }
 0xf3e   :  { %v1871_v20 = vpop.f32.mrb[24].mxu1 }
 0xf3f   :  { %v1875_v54 = vadd.f32 %v1871_v20, %v1800_v53  ;;  %v3511_v55 = vpop.f32.mrb[25].mxu1 }
 0xf41   :  { %v1876_v56 = vmul.f32 %v1875_v54, %v4018_v46 }
 0xf43   :  { %3768 = vtanh.f32 %v1876_v56 }
 0xf4d   :  { %v3769_v57 = vpop.eup %3768 }
 0xf4e   :  { %v1878_v60 = vmul.f32 %v3769_v57, %v4018_v46 }
 0xf50   :  { %v1879_v59 = vadd.f32 %v1878_v60, %v4021_v52 }
 0xf52   :  { %1882 = vrot.lane.b32.xlu1 %v1879_v59, %s3823_s21  ;;  %v1880_v63 = vmul.f32 %v1879_v59, %v1787_v47  ;;  %v2109_v47 = vld [vmem:[#allocation2 + $0x40] sm:$0xff] }
 0xfc4   :  { %v1883_v61 = vpop.permute.xlu1 %1882 }
 0xfc5   :  { %v1885_v62 = vmul.f32 %v1883_v61, %v1879_v59 }
 0xfc7   :  { %1887 = vrot.lane.b32.xlu0 %v1885_v62, %s3822_s16 }
0x1039   :  { %v1888_v4 = vpop.permute.xlu0 %1887 }
0x103a   :  { %v1890_v5 = vadd.f32 %v1888_v4, %v1880_v63 }
0x103c   :  { %3770 = vtanh.f32 %v1890_v5 }
0x1046   :  { %v3771_v0 = vpop.eup %3770 }
0x1047   :  { %1893 = vrot.lane.b32.xlu1 %v3771_v0, %s3819_s9  ;;  %v2211_v0 = vld [vmem:[#allocation2 + $0x48] sm:$0xff] }
0x10b9   :  { %v1894_v1 = vpop.permute.xlu1 %1893 }
0x10ba   :  { %v4195_v8 = vmul.f32 %v1894_v1, %v1879_v59 }
0x10bc   :  { %1904 = vrot.lane.b32.xlu0 %v4195_v8, %s3831_s30 }
0x112e   :  { %v1905_v9 = vpop.permute.xlu0 %1904 }
0x112f   :  { %3517 = vmatmul.mubr.msk.f32.vlgmr.msra.gmra.mrb[18].mxu0 %vm825_vm2, %v1905_v9 }
0x1130   :  { %3667 = vmatpush3.bf16.msra.mxu0 %v3985_v19  ;;  %3530 = vmatprep.mubr.msk.f32.mxu0 %vm3817_vm0, %v3818_v3 }
0x1131   :  { %3671 = vmatprep.subr.bf16.mxu0 %v3816_v2 }
0x1202   :  { %v1974_v11 = vpop.f32.mrb[18].mxu0 }
0x1203   :  { %v1978_v12 = vadd.f32 %v1974_v11, %v1903_v10  ;;  %v3518_v13 = vpop.f32.mrb[19].mxu0 }
0x1205   :  { %v1979_v6 = vmul.f32 %v1978_v12, %v4018_v46 }
0x1207   :  { %3772 = vtanh.f32 %v1979_v6 }
0x1211   :  { %v3773_v15 = vpop.eup %3772 }
0x1212   :  { %v1981_v16 = vmul.f32 %v3773_v15, %v4018_v46 }
0x1214   :  { %v1982_v7 = vadd.f32 %v1981_v16, %v4021_v52 }
0x1216   :  { %1985 = vrot.lane.b32.xlu1 %v1982_v7, %s3823_s21  ;;  %v1983_v21 = vmul.f32 %v1982_v7, %v1890_v5 }
0x1288   :  { %v1986_v17 = vpop.permute.xlu1 %1985 }
0x1289   :  { %v1988_v18 = vmul.f32 %v1986_v17, %v1982_v7 }
0x128b   :  { %1990 = vrot.lane.b32.xlu0 %v1988_v18, %s3822_s16 }
0x12fd   :  { %v1991_v22 = vpop.permute.xlu0 %1990 }
0x12fe   :  { %v1993_v23 = vadd.f32 %v1991_v22, %v1983_v21 }
0x1300   :  { %3774 = vtanh.f32 %v1993_v23 }
0x130a   :  { %v3775_v24 = vpop.eup %3774 }
0x130b   :  { %1996 = vrot.lane.b32.xlu1 %v3775_v24, %s3819_s9 }
0x137d   :  { %v1997_v25 = vpop.permute.xlu1 %1996 }
0x137e   :  { %v4210_v26 = vmul.f32 %v1997_v25, %v1982_v7  ;;  %v2311_v25 = vld [vmem:[#allocation2 + $0x50] sm:$0xff] }
0x1380   :  { %2007 = vrot.lane.b32.xlu0 %v4210_v26, %s3831_s30 }
0x13f2   :  { %v2008_v27 = vpop.permute.xlu0 %2007 }
0x13f3   :  { %3524 = vmatmul.mubr.msk.f32.vlgmr.msra.gmra.mrb[26].mxu1 %vm825_vm2, %v2008_v27 }
0x13f4   :  { %3670 = vmatpush3.bf16.msra.mxu1 %v3985_v19  ;;  %3537 = vmatprep.mubr.msk.f32.mxu1 %vm3817_vm0, %v3818_v3 }
0x13f5   :  { %3674 = vmatprep.subr.bf16.mxu1 %v3816_v2 }
0x14c6   :  { %v2077_v29 = vpop.f32.mrb[26].mxu1 }
0x14c7   :  { %v2081_v30 = vadd.f32 %v2077_v29, %v2006_v28  ;;  %v3525_v31 = vpop.f32.mrb[27].mxu1 }
0x14c9   :  { %v2082_v33 = vmul.f32 %v2081_v30, %v4018_v46 }
0x14cb   :  { %3776 = vtanh.f32 %v2082_v33 }
0x14d5   :  { %v3777_v34 = vpop.eup %3776 }
0x14d6   :  { %v2084_v35 = vmul.f32 %v3777_v34, %v4018_v46 }
0x14d8   :  { %v2085_v36 = vadd.f32 %v2084_v35, %v4021_v52 }
0x14da   :  { %2088 = vrot.lane.b32.xlu1 %v2085_v36, %s3823_s21  ;;  %v2086_v39 = vmul.f32 %v2085_v36, %v1993_v23 }
0x154c   :  { %v2089_v37 = vpop.permute.xlu1 %2088 }
0x154d   :  { %v2091_v38 = vmul.f32 %v2089_v37, %v2085_v36 }
0x154f   :  { %2093 = vrot.lane.b32.xlu0 %v2091_v38, %s3822_s16 }
0x15c1   :  { %v2094_v40 = vpop.permute.xlu0 %2093 }
0x15c2   :  { %v2096_v41 = vadd.f32 %v2094_v40, %v2086_v39 }
0x15c4   :  { %3778 = vtanh.f32 %v2096_v41 }
0x15ce   :  { %v3779_v42 = vpop.eup %3778 }
0x15cf   :  { %2099 = vrot.lane.b32.xlu1 %v3779_v42, %s3819_s9 }
0x1641   :  { %v2100_v43 = vpop.permute.xlu1 %2099 }
0x1642   :  { %v4225_v44 = vmul.f32 %v2100_v43, %v2085_v36 }
0x1644   :  { %2110 = vrot.lane.b32.xlu0 %v4225_v44, %s3831_s30 }
0x16b6   :  { %v2111_v45 = vpop.permute.xlu0 %2110 }
0x16b7   :  { %3531 = vmatmul.mubr.msk.f32.vlgmr.msra.gmra.mrb[20].mxu0 %vm825_vm2, %v2111_v45  ;;  %v2413_v45 = vld [vmem:[#allocation2 + $0x58] sm:$0xff] }
0x16b8   :  { %3673 = vmatpush3.bf16.msra.mxu0 %v3985_v19  ;;  %3544 = vmatprep.mubr.msk.f32.mxu0 %vm3817_vm0, %v3818_v3 }
0x16b9   :  { %3677 = vmatprep.subr.bf16.mxu0 %v3816_v2 }
0x178a   :  { %v2180_v48 = vpop.f32.mrb[20].mxu0 }
0x178b   :  { %v2184_v49 = vadd.f32 %v2180_v48, %v2109_v47  ;;  %v3532_v51 = vpop.f32.mrb[21].mxu0 }
0x178d   :  { %v2185_v53 = vmul.f32 %v2184_v49, %v4018_v46 }
0x178f   :  { %3780 = vtanh.f32 %v2185_v53 }
0x1799   :  { %v3781_v20 = vpop.eup %3780 }
0x179a   :  { %v2187_v54 = vmul.f32 %v3781_v20, %v4018_v46 }
0x179c   :  { %v2188_v55 = vadd.f32 %v2187_v54, %v4021_v52 }
0x179e   :  { %2191 = vrot.lane.b32.xlu1 %v2188_v55, %s3823_s21  ;;  %v2189_v60 = vmul.f32 %v2188_v55, %v2096_v41 }
0x1810   :  { %v2192_v56 = vpop.permute.xlu1 %2191 }
0x1811   :  { %v2194_v57 = vmul.f32 %v2192_v56, %v2188_v55 }
0x1813   :  { %2196 = vrot.lane.b32.xlu0 %v2194_v57, %s3822_s16 }
0x1885   :  { %v2197_v59 = vpop.permute.xlu0 %2196 }
0x1886   :  { %v2199_v61 = vadd.f32 %v2197_v59, %v2189_v60 }
0x1888   :  { %3782 = vtanh.f32 %v2199_v61 }
0x1892   :  { %v3783_v62 = vpop.eup %3782 }
0x1893   :  { %2202 = vrot.lane.b32.xlu1 %v3783_v62, %s3819_s9 }
0x1905   :  { %v2203_v63 = vpop.permute.xlu1 %2202 }
0x1906   :  { %v2205_v4 = vmul.f32 %v2203_v63, %v2188_v55 }
0x1908   :  { %2207 = vrot.lane.b32.xlu0 %v2205_v4, %s3831_s30 }
0x197a   :  { %v2208_v5 = vpop.permute.xlu0 %2207 }
0x197b   :  { %2210 = vst.msk [vmem:[#allocation3 + $0x8] sm:$0xff] %vm825_vm2, %v2208_v5  ;;  %3538 = vmatmul.mubr.msk.f32.vlgmr.msra.gmra.mrb[28].mxu1 %vm825_vm2, %v2208_v5  ;;  %v2511_v5 = vld [vmem:[#allocation2 + $0x60] sm:$0xff] }
0x197c   :  { %3676 = vmatpush3.bf16.msra.mxu1 %v3985_v19  ;;  %3551 = vmatprep.mubr.msk.f32.mxu1 %vm3817_vm0, %v3818_v3 }
0x197d   :  { %3680 = vmatprep.subr.bf16.mxu1 %v3816_v2 }
0x1a4e   :  { %v2280_v1 = vpop.f32.mrb[28].mxu1 }
0x1a4f   :  { %v2284_v9 = vadd.f32 %v2280_v1, %v2211_v0  ;;  %v3539_v10 = vpop.f32.mrb[29].mxu1 }
0x1a51   :  { %v2285_v11 = vmul.f32 %v2284_v9, %v4018_v46 }
0x1a53   :  { %3784 = vtanh.f32 %v2285_v11 }
0x1a5d   :  { %v3785_v12 = vpop.eup %3784 }
0x1a5e   :  { %v2287_v13 = vmul.f32 %v3785_v12, %v4018_v46 }
0x1a60   :  { %v2288_v6 = vadd.f32 %v2287_v13, %v4021_v52 }
0x1a62   :  { %2291 = vrot.lane.b32.xlu1 %v2288_v6, %s3823_s21  ;;  %v2289_v7 = vmul.f32 %v2288_v6, %v2199_v61 }
0x1ad4   :  { %v2292_v15 = vpop.permute.xlu1 %2291 }
0x1ad5   :  { %v2294_v16 = vmul.f32 %v2292_v15, %v2288_v6 }
0x1ad7   :  { %2296 = vrot.lane.b32.xlu0 %v2294_v16, %s3822_s16 }
0x1b49   :  { %v2297_v17 = vpop.permute.xlu0 %2296 }
0x1b4a   :  { %v2299_v18 = vadd.f32 %v2297_v17, %v2289_v7 }
0x1b4c   :  { %3786 = vtanh.f32 %v2299_v18 }
0x1b56   :  { %v3787_v21 = vpop.eup %3786 }
0x1b57   :  { %2302 = vrot.lane.b32.xlu1 %v3787_v21, %s3819_s9 }
0x1bc9   :  { %v2303_v22 = vpop.permute.xlu1 %2302 }
0x1bca   :  { %v4253_v23 = vmul.f32 %v2303_v22, %v2288_v6 }
0x1bcc   :  { %2312 = vrot.lane.b32.xlu0 %v4253_v23, %s3831_s30 }
0x1c3e   :  { %v2313_v24 = vpop.permute.xlu0 %2312 }
0x1c3f   :  { %3545 = vmatmul.mubr.msk.f32.vlgmr.msra.gmra.mrb[22].mxu0 %vm825_vm2, %v2313_v24 }
0x1c40   :  { %3679 = vmatpush3.bf16.msra.mxu0 %v3985_v19  ;;  %3558 = vmatprep.mubr.msk.f32.mxu0 %vm3817_vm0, %v3818_v3 }
0x1c41   :  { %3683 = vmatprep.subr.bf16.mxu0 %v3816_v2 }
0x1d12   :  { %v2382_v27 = vpop.f32.mrb[22].mxu0 }
0x1d13   :  { %v2386_v28 = vadd.f32 %v2382_v27, %v2311_v25  ;;  %v3546_v29 = vpop.f32.mrb[23].mxu0  ;;  %v2614_v25 = vld [vmem:[#allocation2 + $0x68] sm:$0xff] }
0x1d15   :  { %v2387_v30 = vmul.f32 %v2386_v28, %v4018_v46 }
0x1d17   :  { %3788 = vtanh.f32 %v2387_v30 }
0x1d21   :  { %v3789_v31 = vpop.eup %3788 }
0x1d22   :  { %v2389_v33 = vmul.f32 %v3789_v31, %v4018_v46 }
0x1d24   :  { %v2390_v34 = vadd.f32 %v2389_v33, %v4021_v52 }
0x1d26   :  { %2393 = vrot.lane.b32.xlu1 %v2390_v34, %s3823_s21  ;;  %v2391_v37 = vmul.f32 %v2390_v34, %v2299_v18 }
0x1d98   :  { %v2394_v35 = vpop.permute.xlu1 %2393 }
0x1d99   :  { %v2396_v36 = vmul.f32 %v2394_v35, %v2390_v34 }
0x1d9b   :  { %2398 = vrot.lane.b32.xlu0 %v2396_v36, %s3822_s16 }
0x1e0d   :  { %v2399_v38 = vpop.permute.xlu0 %2398 }
0x1e0e   :  { %v2401_v39 = vadd.f32 %v2399_v38, %v2391_v37 }
0x1e10   :  { %3790 = vtanh.f32 %v2401_v39 }
0x1e1a   :  { %v3791_v40 = vpop.eup %3790 }
0x1e1b   :  { %2404 = vrot.lane.b32.xlu1 %v3791_v40, %s3819_s9 }
0x1e8d   :  { %v2405_v41 = vpop.permute.xlu1 %2404 }
0x1e8e   :  { %v4268_v42 = vmul.f32 %v2405_v41, %v2390_v34 }
0x1e90   :  { %2414 = vrot.lane.b32.xlu0 %v4268_v42, %s3831_s30 }
0x1f02   :  { %v2415_v43 = vpop.permute.xlu0 %2414 }
0x1f03   :  { %3552 = vmatmul.mubr.msk.f32.vlgmr.msra.gmra.mrb[30].mxu1 %vm825_vm2, %v2415_v43 }
0x1f04   :  { %3682 = vmatpush3.bf16.msra.mxu1 %v3985_v19  ;;  %3565 = vmatprep.mubr.msk.f32.mxu1 %vm3817_vm0, %v3818_v3 }
0x1f05   :  { %3686 = vmatprep.subr.bf16.mxu1 %v3816_v2 }
0x1fd6   :  { %v2484_v47 = vpop.f32.mrb[30].mxu1 }
0x1fd7   :  { %v2488_v48 = vadd.f32 %v2484_v47, %v2413_v45  ;;  %v3553_v49 = vpop.f32.mrb[31].mxu1  ;;  %v2716_v45 = vld [vmem:[#allocation2 + $0x70] sm:$0xff] }
0x1fd9   :  { %v2489_v51 = vmul.f32 %v2488_v48, %v4018_v46 }
0x1fdb   :  { %3792 = vtanh.f32 %v2489_v51 }
0x1fe5   :  { %v3793_v53 = vpop.eup %3792 }
0x1fe6   :  { %v2491_v20 = vmul.f32 %v3793_v53, %v4018_v46 }
0x1fe8   :  { %v2492_v54 = vadd.f32 %v2491_v20, %v4021_v52 }
0x1fea   :  { %2495 = vrot.lane.b32.xlu1 %v2492_v54, %s3823_s21  ;;  %v2493_v57 = vmul.f32 %v2492_v54, %v2401_v39 }
0x205c   :  { %v2496_v55 = vpop.permute.xlu1 %2495 }
0x205d   :  { %v2498_v56 = vmul.f32 %v2496_v55, %v2492_v54 }
0x205f   :  { %2500 = vrot.lane.b32.xlu0 %v2498_v56, %s3822_s16 }
0x20d1   :  { %v2501_v60 = vpop.permute.xlu0 %2500 }
0x20d2   :  { %v2503_v59 = vadd.f32 %v2501_v60, %v2493_v57 }
0x20d4   :  { %3794 = vtanh.f32 %v2503_v59 }
0x20de   :  { %v3795_v61 = vpop.eup %3794 }
0x20df   :  { %2506 = vrot.lane.b32.xlu1 %v3795_v61, %s3819_s9 }
0x2151   :  { %v2507_v62 = vpop.permute.xlu1 %2506 }
0x2152   :  { %v4283_v63 = vmul.f32 %v2507_v62, %v2492_v54 }
0x2154   :  { %2513 = vrot.lane.b32.xlu0 %v4283_v63, %s3831_s30 }
0x21c6   :  { %v2514_v4 = vpop.permute.xlu0 %2513 }
0x21c7   :  { %3559 = vmatmul.mubr.msk.f32.vlgmr.msra.gmra.mrb[24].mxu0 %vm825_vm2, %v2514_v4 }
0x21c8   :  { %3685 = vmatpush3.bf16.msra.mxu0 %v3985_v19  ;;  %3572 = vmatprep.mubr.msk.f32.mxu0 %vm3817_vm0, %v3818_v3 }
0x229a   :  { %v2583_v0 = vpop.f32.mrb[24].mxu0 }
0x229b   :  { %v2587_v1 = vadd.f32 %v2583_v0, %v2511_v5  ;;  %v3560_v9 = vpop.f32.mrb[25].mxu0  ;;  %v2818_v0 = vld [vmem:[#allocation2 + $0x78] sm:$0xff] }
0x229d   :  { %v2588_v10 = vmul.f32 %v2587_v1, %v4018_v46 }
0x229f   :  { %3796 = vtanh.f32 %v2588_v10 }
0x22a9   :  { %v3797_v11 = vpop.eup %3796 }
0x22aa   :  { %v2590_v12 = vmul.f32 %v3797_v11, %v4018_v46 }
0x22ac   :  { %v2591_v13 = vadd.f32 %v2590_v12, %v4021_v52 }
0x22ae   :  { %2594 = vrot.lane.b32.xlu1 %v2591_v13, %s3823_s21  ;;  %v2592_v16 = vmul.f32 %v2591_v13, %v2503_v59 }
0x2320   :  { %v2595_v6 = vpop.permute.xlu1 %2594 }
0x2321   :  { %v2597_v15 = vmul.f32 %v2595_v6, %v2591_v13 }
0x2323   :  { %2599 = vrot.lane.b32.xlu0 %v2597_v15, %s3822_s16 }
0x2395   :  { %v2600_v7 = vpop.permute.xlu0 %2599 }
0x2396   :  { %v2602_v17 = vadd.f32 %v2600_v7, %v2592_v16 }
0x2398   :  { %3798 = vtanh.f32 %v2602_v17 }
0x23a2   :  { %v3799_v18 = vpop.eup %3798 }
0x23a3   :  { %2605 = vrot.lane.b32.xlu1 %v3799_v18, %s3819_s9 }
0x2415   :  { %v2606_v21 = vpop.permute.xlu1 %2605 }
0x2416   :  { %v4297_v22 = vmul.f32 %v2606_v21, %v2591_v13 }
0x2418   :  { %2615 = vrot.lane.b32.xlu0 %v4297_v22, %s3831_s30 }
0x248a   :  { %v2616_v24 = vpop.permute.xlu0 %2615 }
0x248b   :  { %3566 = vmatmul.mubr.msk.f32.vlgmr.msra.gmra.mrb[32].mxu1 %vm825_vm2, %v2616_v24 }
0x248c   :  { %3688 = vmatpush3.bf16.msra.mxu1 %v3985_v19  ;;  %3579 = vmatprep.mubr.msk.f32.mxu1 %vm3817_vm0, %v3818_v3 }
0x248d   :  { %3721 = vmatprep.subr.bf16.mxu1 %v3816_v2 }
0x255e   :  { %v2685_v27 = vpop.f32.mrb[32].mxu1 }
0x255f   :  { %v2689_v28 = vadd.f32 %v2685_v27, %v2614_v25  ;;  %v3567_v29 = vpop.f32.mrb[33].mxu1  ;;  %v2941_v25 = vld [vmem:[%s4496_s4 + $0x98] sm:$0xff] }
0x2560   :  { %v2924_v29 = vld [vmem:[%s4496_s4 + $0x10] sm:$0xff] }
0x2561   :  { %v2690_v30 = vmul.f32 %v2689_v28, %v4018_v46 }
0x2563   :  { %3800 = vtanh.f32 %v2690_v30  ;;  %v2925_v30 = vld [vmem:[%s4496_s4 + $0x18] sm:$0xff] }
0x256d   :  { %v3801_v31 = vpop.eup %3800 }
0x256e   :  { %v2692_v33 = vmul.f32 %v3801_v31, %v4018_v46  ;;  %v2942_v31 = vld [vmem:[%s4496_s4 + $0xa0] sm:$0xff] }
0x2570   :  { %v2693_v34 = vadd.f32 %v2692_v33, %v4021_v52  ;;  %v2943_v33 = vld [vmem:[%s4496_s4 + $0xa8] sm:$0xff] }
0x2572   :  { %2696 = vrot.lane.b32.xlu1 %v2693_v34, %s3823_s21  ;;  %v2694_v36 = vmul.f32 %v2693_v34, %v2602_v17 }
0x25e4   :  { %v2697_v19 = vpop.permute.xlu1 %2696 }
0x25e5   :  { %v2699_v35 = vmul.f32 %v2697_v19, %v2693_v34  ;;  %v3697_v19 = vpack.c.bf16 %v2943_v33, %v2942_v31 }
0x25e7   :  { %2701 = vrot.lane.b32.xlu0 %v2699_v35, %s3822_s16  ;;  %v2926_v35 = vld [vmem:[%s4496_s4 + $0x20] sm:$0xff] }
0x2659   :  { %v2702_v37 = vpop.permute.xlu0 %2701 }
0x265a   :  { %v2704_v38 = vadd.f32 %v2702_v37, %v2694_v36  ;;  %v2927_v36 = vld [vmem:[%s4496_s4 + $0x28] sm:$0xff]  ;;  %v2944_v37 = vld [vmem:[%s4496_s4 + $0xb0] sm:$0xff] }
0x265c   :  { %3802 = vtanh.f32 %v2704_v38 }
0x2666   :  { %v3803_v39 = vpop.eup %3802 }
0x2667   :  { %2707 = vrot.lane.b32.xlu1 %v3803_v39, %s3819_s9 }
0x26d9   :  { %v2708_v40 = vpop.permute.xlu1 %2707 }
0x26da   :  { %v2710_v41 = vmul.f32 %v2708_v40, %v2693_v34  ;;  %v3695_v34 = vpack.c.bf16 %v2925_v30, %v2924_v29  ;;  %v2928_v40 = vld [vmem:[%s4496_s4 + $0x30] sm:$0xff] }
0x26dc   :  { %2717 = vrot.lane.b32.xlu0 %v2710_v41, %s3831_s30 }
0x274e   :  { %v2718_v43 = vpop.permute.xlu0 %2717 }
0x274f   :  { %3573 = vmatmul.mubr.msk.f32.vlgmr.msra.gmra.mrb[26].mxu0 %vm825_vm2, %v2718_v43  ;;  %v2946_v43 = vld [vmem:[%s4496_s4 + $0xc0] sm:$0xff] }
0x2822   :  { %v2787_v47 = vpop.f32.mrb[26].mxu0 }
0x2823   :  { %v2791_v48 = vadd.f32 %v2787_v47, %v2716_v45  ;;  %v3574_v49 = vpop.f32.mrb[27].mxu0 }
0x2824   :  { %v2931_v49 = vld [vmem:[%s4496_s4 + $0x48] sm:$0xff] }
0x2825   :  { %v2792_v51 = vmul.f32 %v2791_v48, %v4018_v46  ;;  %v2930_v48 = vld [vmem:[%s4496_s4 + $0x40] sm:$0xff] }
0x2827   :  { %3804 = vtanh.f32 %v2792_v51  ;;  %v2948_v51 = vld [vmem:[%s4496_s4 + $0xd0] sm:$0xff] }
0x2831   :  { %v3805_v53 = vpop.eup %3804 }
0x2832   :  { %v2794_v20 = vmul.f32 %v3805_v53, %v4018_v46  ;;  %v3707_v53 = vpack.c.bf16 %v2931_v49, %v2930_v48 }
0x2834   :  { %v2795_v54 = vadd.f32 %v2794_v20, %v4021_v52 }
0x2836   :  { %2798 = vrot.lane.b32.xlu1 %v2795_v54, %s3823_s21  ;;  %v2796_v57 = vmul.f32 %v2795_v54, %v2704_v38  ;;  %v3699_v38 = vpack.c.bf16 %v2927_v36, %v2926_v35 }
0x28a8   :  { %v2799_v55 = vpop.permute.xlu1 %2798 }
0x28a9   :  { %v2801_v56 = vmul.f32 %v2799_v55, %v2795_v54  ;;  %v2933_v55 = vld [vmem:[%s4496_s4 + $0x58] sm:$0xff] }
0x28ab   :  { %2803 = vrot.lane.b32.xlu0 %v2801_v56, %s3822_s16 }
0x291d   :  { %v2804_v60 = vpop.permute.xlu0 %2803 }
0x291e   :  { %v2806_v59 = vadd.f32 %v2804_v60, %v2796_v57  ;;  %v2950_v57 = vld [vmem:[%s4496_s4 + $0xe0] sm:$0xff]  ;;  %v2951_v60 = vld [vmem:[%s4496_s4 + $0xe8] sm:$0xff] }
0x2920   :  { %3806 = vtanh.f32 %v2806_v59 }
0x292a   :  { %v3807_v61 = vpop.eup %3806 }
0x292b   :  { %2809 = vrot.lane.b32.xlu1 %v3807_v61, %s3819_s9  ;;  %v2934_v61 = vld [vmem:[%s4496_s4 + $0x60] sm:$0xff] }
0x299d   :  { %v2810_v62 = vpop.permute.xlu1 %2809 }
0x299e   :  { %v2812_v4 = vmul.f32 %v2810_v62, %v2795_v54  ;;  %v2932_v54 = vld [vmem:[%s4496_s4 + $0x50] sm:$0xff]  ;;  %v2935_v62 = vld [vmem:[%s4496_s4 + $0x68] sm:$0xff] }
0x299f   :  { %v3711_v56 = vpack.c.bf16 %v2933_v55, %v2932_v54 }
0x29a0   :  { %2819 = vrot.lane.b32.xlu0 %v2812_v4, %s3831_s30 }
0x2a12   :  { %v2820_v5 = vpop.permute.xlu0 %2819 }
0x2a13   :  { %3580 = vmatmul.mubr.msk.f32.vlgmr.msra.gmra.mrb[34].mxu1 %vm825_vm2, %v2820_v5  ;;  %v2952_v5 = vld [vmem:[%s4496_s4 + $0xf0] sm:$0xff]  ;;  %vm3043_vm2 = vcmask 211968  }
0x2a14   :  { %3590 = vmatprep.mubr.msk.f32.mxu1 %vm3817_vm0, %v3818_v3  ;;  %vm3835_vm0 = vmmov 1  }
0x2a15   :  { %vm3726_vm1 = vmpackc.low %vm3047_vm15, %vm3835_vm0 }
0x2ae6   :  { %v2889_v1 = vpop.f32.mrb[34].mxu1 }
0x2ae7   :  { %v2893_v9 = vadd.f32 %v2889_v1, %v2818_v0  ;;  %v3581_v10 = vpop.f32.mrb[35].mxu1  ;;  %v2953_v0 = vld [vmem:[%s4496_s4 + $0xf8] sm:$0xff]  ;;  %v2936_v1 = vld [vmem:[%s4496_s4 + $0x70] sm:$0xff] }
0x2ae8   :  { %v2937_v10 = vld [vmem:[%s4496_s4 + $0x78] sm:$0xff] }
0x2ae9   :  { %v2894_v11 = vmul.f32 %v2893_v9, %v4018_v46  ;;  %v3717_v9 = vpack.c.bf16 %v2953_v0, %v2952_v5 }
0x2aeb   :  { %3808 = vtanh.f32 %v2894_v11  ;;  %v3719_v11 = vpack.c.bf16 %v2937_v10, %v2936_v1 }
0x2af5   :  { %v3809_v12 = vpop.eup %3808 }
0x2af6   :  { %v2896_v13 = vmul.f32 %v3809_v12, %v4018_v46 }
0x2af8   :  { %v4327_v6 = vadd.f32 %v2896_v13, %v4021_v52 }
0x2afa   :  { %2900 = vrot.lane.b32.xlu1 %v4327_v6, %s3823_s21  ;;  %v2898_v3 = vmul.f32 %v4327_v6, %v2806_v59  ;;  %v3713_v59 = vpack.c.bf16 %v2951_v60, %v2950_v57 }
0x2b6c   :  { %v2901_v15 = vpop.permute.xlu1 %2900 }
0x2b6d   :  { %v2903_v16 = vmul.f32 %v2901_v15, %v4327_v6 }
0x2b6f   :  { %2905 = vrot.lane.b32.xlu0 %v2903_v16, %s3822_s16 }
0x2b73   :  { %2307 = vrot.lane.b32.xlu0 %v4253_v23, %s3823_s21 }
0x2b77   :  { %2409 = vrot.lane.b32.xlu0 %v4268_v42, %s3821_s15 }
0x2b7b   :  { %2610 = vrot.lane.b32.xlu0 %v4297_v22, %s3822_s16  ;;  %v2939_v22 = vld [vmem:[%s4496_s4 + $0x88] sm:$0xff] }
0x2b7f   :  { %2712 = vrot.lane.b32.xlu0 %v2710_v41, %s3819_s9  ;;  %v2929_v41 = vld [vmem:[%s4496_s4 + $0x38] sm:$0xff] }
0x2b80   :  { %v3703_v45 = vpack.c.bf16 %v2929_v41, %v2928_v40 }
0x2b83   :  { %2814 = vrot.lane.b32.xlu0 %v2812_v4, %s3824_s0  ;;  %v3715_v4 = vpack.c.bf16 %v2935_v62, %v2934_v61 }
0x2be1   :  { %v2906_v46 = vpop.permute.xlu0 %2905 }
0x2be2   :  { %v2908_v52 = vadd.f32 %v2906_v46, %v2898_v3 }
0x2be4   :  { %3810 = vtanh.f32 %v2908_v52 }
0x2be5   :  { %v2308_v7 = vpop.permute.xlu0 %2307 }
0x2be6   :  { %2310 = vst.msk [vmem:[#allocation3 + $0x8] sm:$0xff] %vm1492_vm8, %v2308_v7 }
0x2be9   :  { %v2410_v23 = vpop.permute.xlu0 %2409 }
0x2bea   :  { %2412 = vst.msk [vmem:[#allocation3 + $0x8] sm:$0xff] %vm1595_vm9, %v2410_v23 }
0x2beb   :  { %2510 = vst.msk [vmem:[#allocation3 + $0x8] sm:$0xff] %vm1694_vm10, %v4283_v63  ;;  %v2938_v63 = vld [vmem:[%s4496_s4 + $0x80] sm:$0xff] }
0x2bec   :  { %v3689_v24 = vpack.c.bf16 %v2939_v22, %v2938_v63  ;;  %v3035_v63 = vld [vmem:[%s4497_s6 + $0x18] sm:$0x3] }
0x2bed   :  { %v2611_v42 = vpop.permute.xlu0 %2610 }
0x2bee   :  { %v3811_v17 = vpop.eup %3810  ;;  %2613 = vst.msk [vmem:[#allocation3 + $0x8] sm:$0xff] %vm1798_vm11, %v2611_v42  ;;  %3690 = vmatprep.subr.bf16.mxu0 %v3689_v24  ;;  %v3170_v24 = vld [vmem:[%s4498_s5] ss:$0 sm:$0xff] }
0x2bef   :  { %2911 = vrot.lane.b32.xlu1 %v3811_v17, %s3819_s9  ;;  %v3033_v17 = vld [vmem:[%s4497_s6 + $0x8] sm:$0xff] }
0x2bf1   :  { %v2713_v18 = vpop.permute.xlu0 %2712 }
0x2bf2   :  { %2715 = vst.msk [vmem:[#allocation3 + $0x8] sm:$0xff] %vm1901_vm12, %v2713_v18 }
0x2bf3   :  { %1489 = vrot.lane.b32.xlu1 %v4135_v58, %s3823_s21  ;;  %v2922_v58 = vld [vmem:[%s4496_s4] sm:$0xff] }
0x2bf5   :  { %v2815_v21 = vpop.permute.xlu0 %2814 }
0x2bf6   :  { %2817 = vst.msk [vmem:[#allocation3 + $0x8] sm:$0xff] %vm2004_vm13, %v2815_v21  ;;  %v3034_v21 = vld [vmem:[%s4497_s6 + $0x10] sm:$0xff] }
0x2bf7   :  { %1592 = vrot.lane.b32.xlu1 %v4150_v14, %s3821_s15  ;;  %v2923_v14 = vld [vmem:[%s4496_s4 + $0x8] sm:$0xff]  ;;  %v3725_v22 = vpack.c.bf16 %v3035_v63, %v3034_v21 }
0x2bf8   :  { %v3691_v27 = vpack.c.bf16 %v2923_v14, %v2922_v58 }
0x2bfa   :  { %3692 = vmatpush3.bf16.msra.mxu0 %v3691_v27  ;;  %v3171_v27 = vld [vmem:[%s4499_s7] ss:$0 sm:$0xff] }
0x2bfb   :  { %1795 = vrot.lane.b32.xlu1 %v4180_v50, %s3822_s16  ;;  %v2940_v50 = vld [vmem:[%s4496_s4 + $0x90] sm:$0xff] }
0x2bfc   :  { %v3693_v28 = vpack.c.bf16 %v2941_v25, %v2940_v50 }
0x2bfe   :  { %3694 = vmatprep.subr.bf16.mxu0 %v3693_v28 }
0x2bff   :  { %1898 = vrot.lane.b32.xlu1 %v4195_v8, %s3819_s9  ;;  %v2945_v8 = vld [vmem:[%s4496_s4 + $0xb8] sm:$0xff]  ;;  %3696 = vmatpush3.bf16.msra.mxu0 %v3695_v34 }
0x2c00   :  { %3698 = vmatprep.subr.bf16.mxu0 %v3697_v19  ;;  %v3701_v39 = vpack.c.bf16 %v2945_v8, %v2944_v37 }
0x2c03   :  { %2001 = vrot.lane.b32.xlu1 %v4210_v26, %s3824_s0  ;;  %v2947_v26 = vld [vmem:[%s4496_s4 + $0xc8] sm:$0xff]  ;;  %3700 = vmatpush3.bf16.msra.mxu0 %v3699_v38 }
0x2c04   :  { %3702 = vmatprep.subr.bf16.mxu0 %v3701_v39  ;;  %v3705_v47 = vpack.c.bf16 %v2947_v26, %v2946_v43 }
0x2c07   :  { %2104 = vrot.lane.b32.xlu1 %v4225_v44, %s3820_s10  ;;  %v2949_v44 = vld [vmem:[%s4496_s4 + $0xd8] sm:$0xff]  ;;  %3704 = vmatpush3.bf16.msra.mxu0 %v3703_v45 }
0x2c08   :  { %3706 = vmatprep.subr.bf16.mxu0 %v3705_v47  ;;  %v3709_v20 = vpack.c.bf16 %v2949_v44, %v2948_v51 }
0x2c0b   :  { %3708 = vmatpush3.bf16.msra.mxu0 %v3707_v53 }
0x2c0c   :  { %3710 = vmatprep.subr.bf16.mxu0 %v3709_v20 }
0x2c0f   :  { %3712 = vmatpush3.bf16.msra.mxu0 %v3711_v56 }
0x2c10   :  { %3714 = vmatprep.subr.bf16.mxu0 %v3713_v59 }
0x2c13   :  { %3716 = vmatpush3.bf16.msra.mxu0 %v3715_v4 }
0x2c14   :  { %3718 = vmatprep.subr.bf16.mxu0 %v3717_v9 }
0x2c17   :  { %3720 = vmatpush3.bf16.msra.mxu0 %v3719_v11 }
0x2c61   :  { %v2912_v12 = vpop.permute.xlu1 %2911 }
0x2c62   :  { %v2914_v13 = vmul.f32 %v2912_v12, %v4327_v6 }
0x2c64   :  { %2916 = vrot.lane.b32.xlu0 %v2914_v13, %s3820_s10 }
0x2c65   :  { %v1490_v15 = vpop.permute.xlu1 %1489 }
0x2c66   :  { %1493 = vst.msk [vmem:[#allocation3] sm:$0xff] %vm1492_vm8, %v1490_v15 }
0x2c69   :  { %v1593_v16 = vpop.permute.xlu1 %1592 }
0x2c6a   :  { %1596 = vst.msk [vmem:[#allocation3] sm:$0xff] %vm1595_vm9, %v1593_v16 }
0x2c6b   :  { %1695 = vst.msk [vmem:[#allocation3] sm:$0xff] %vm1694_vm10, %v4165_v32  ;;  %v3032_v32 = vld [vmem:[%s4497_s6] sm:$0xff] }
0x2c6c   :  { %v3722_v18 = vpack.c.bf16 %v3033_v17, %v3032_v32 }
0x2c6d   :  { %v1796_v3 = vpop.permute.xlu1 %1795 }
0x2c6e   :  { %1799 = vst.msk [vmem:[#allocation3] sm:$0xff] %vm1798_vm11, %v1796_v3  ;;  %3723 = vmatpush3.bf16.msra.mxu1 %v3722_v18 }
0x2c6f   :  { %3724 = vmatprep.subr.bf16.mxu1 %v3816_v2 }
0x2c71   :  { %v1899_v46 = vpop.permute.xlu1 %1898 }
0x2c72   :  { %1902 = vst.msk [vmem:[#allocation3] sm:$0xff] %vm1901_vm12, %v1899_v46  ;;  %3727 = vmatpush3.bf16.msk.msra.mxu1 %vm3726_vm1, %v3725_v22 }
0x2c75   :  { %v2002_v52 = vpop.permute.xlu1 %2001 }
0x2c76   :  { %2005 = vst.msk [vmem:[#allocation3] sm:$0xff] %vm2004_vm13, %v2002_v52 }
0x2c79   :  { %v2105_v6 = vpop.permute.xlu1 %2104 }
0x2c7a   :  { %2108 = vst.msk [vmem:[#allocation3] sm:$0xff] %vm2107_vm14, %v2105_v6 }
0x2c81   :  { %v2920_v42 = vld [vmem:[#allocation3] sm:$0xff] }
0x2cd6   :  { %v2917_v7 = vpop.permute.xlu0 %2916 }
0x2cd7   :  { %2919 = vst.msk [vmem:[#allocation3 + $0x8] sm:$0xff] %vm2107_vm14, %v2917_v7 }
0x2cde   :  { %v2921_v23 = vld [vmem:[#allocation3 + $0x8] sm:$0xff] }
0x2cdf   :  { %3025 = vmatprep.mubr.f32.mxu0 %v2921_v23 }
0x2ce0   :  { %3026 = vmatmul.mubr.f32.vlgmr.msra.gmra.mrb[28].mxu0 %v2920_v42 }
0x2db3   :  { %v3318_v58 = vpop.f32.mrb[28].mxu0 }
0x2db4   :  { %v3319_v14 = vpop.f32.mrb[29].mxu0 }
0x2db5   :  { %v3320_v2 = vadd.f32 %v3319_v14, %v3318_v58 }
0x2db7   :  { %v3028_v50 = vadd.f32 %v3320_v2, %v3170_v24 }
0x2db9   :  { %v3031_v25 = vmax.f32 %v3028_v50, 0.0 }
0x2dbb   :  { %3591 = vmatmul.mubr.msk.f32.vlgmr.msra.gmra.mrb[36].mxu1 %vm3043_vm2, %v3031_v25 }
0x2e8e   :  { %v3117_v28 = vpop.f32.mrb[36].mxu1 }
0x2e8f   :  { %v3118_v29 = vadd.f32 %v3171_v27, %v3117_v28  ;;  %v3592_v30 = vpop.f32.mrb[37].mxu1 }
0x2e91   :  { %v3122_v31 = vsel %vm3121_vm3, %v3118_v29, -inf }
0x2e92   :  { %3123 = vmax.xlane.f32.xlu0 %v3122_v31 }
0x2f1f   :  { %v3124_v33 = vpop.xlane.xlu0 %3123 }
0x2f20   :  { %v3125_v34 = vsub.f32 %v3118_v29, %v3124_v33 }
0x2f22   :  { %v3126_v19 = vmul.f32 1.442695, %v3125_v34 }
0x2f24   :  { %3812 = vpow2.f32 %v3126_v19 }
0x2f2e   :  { %v3813_v35 = vpop.eup %3812 }
0x2f2f   :  { %v3128_v36 = vsel %vm3121_vm3, %v3813_v35, 0.0 }
0x2f30   :  { %3129 = vadd.xlane.f32.xlu1 %v3128_v36 }
0x2fbd   :  { %v3130_v37 = vpop.xlane.xlu1 %3129 }
0x2fbe   :  { %3814 = vrcp.f32 %v3130_v37 }
0x2fc8   :  { %v3815_v8 = vpop.eup %3814 }
0x2fc9   :  { %v3132_v38 = vmul.f32 %v3815_v8, %v3813_v35 }
0x2fcb   :  { %3133 = vst.msk [vmem:[%s4500_s8] sm:$0xff] %vm3121_vm3, %v3132_v38 }

</bundles_post_ra>
